<compile_context>
chip_gen: v6e
topology: v6e:2x2x1
jax: 0.10.0
libtpu: 0.0.40
codegen_flags: <defaults>
</compile_context>

<pallas_src>
import functools

import numpy as np

import jax
import jax.numpy as jnp
from jax.experimental import pallas as pl
from jax.experimental.pallas import tpu as pltpu


# ---------------------------------------------------------------------------
# Fused Pallas kernel: conv3x3+LReLU -> (concat folded into K) conv3x3+LReLU
# ---------------------------------------------------------------------------
def _decoder_block_kernel(up_ref, skip_ref, m_ref, w1_ref, w2_ref, o_ref,
                          *, img_w, lanes, neg_slope, n_out, mxu_dtype):
    # Tap offsets in flattened row-major coordinates, matching the (ky, kx)
    # order used to reshape the weight matrices in the wrapper.
    offs = [dy * img_w + dx for dy in (-1, 0, 1) for dx in (-1, 0, 1)]
    masks = m_ref[...]                                # (9, 1, lanes) f32 borders

    def im2col(src_f32):                              # f32 (C, lanes) -> mxu_dtype (9C, lanes)
        cols = []
        for t, off in enumerate(offs):
            if off == 0:
                # Centre tap: mask is all-ones, skip the multiply.
                cols.append(src_f32.astype(mxu_dtype))
            else:
                # shifted[p] = src[p + off] (circular roll over the lane axis);
                # the 0/1 border masks zero every wrapped row/image-boundary
                # entry and thereby realize the conv's "same" zero padding.
                sh = pltpu.roll(src_f32, shift=(-off) % lanes, axis=1)
                cols.append((sh * masks[t]).astype(mxu_dtype))
        return jnp.concatenate(cols, axis=0)

    def lrelu(v):
        return jnp.where(v >= 0, v, neg_slope * v)

    # conv1 (3x3, 'same', no bias) on the upsampled input + LeakyReLU: one
    # K = 9*Cin_p MXU contraction (bf16 operands, f32 accumulation).
    deconv = lrelu(jnp.dot(w1_ref[...], im2col(up_ref[0]),
                           preferred_element_type=jnp.float32))

    # conv2 on concat([deconv, skip]) + LeakyReLU: the channel concat is folded
    # into a single K = 9*(Cout_p + Cs_p) contraction against the fused weight.
    cols2 = jnp.concatenate([im2col(deconv), im2col(skip_ref[0])], axis=0)
    out = lrelu(jnp.dot(w2_ref[...], cols2, preferred_element_type=jnp.float32))

    # Emit exactly n_out channels (avoids a post-kernel slice copy).
    o_ref[0] = out[:n_out].astype(o_ref.dtype)


# ---------------------------------------------------------------------------
# Helpers
# ---------------------------------------------------------------------------
def _round_up(v, m):
    return (v + m - 1) // m * m


def _weight_to_mat(w_oihw, co_p, ci_p, dtype):
    """OIHW conv weight -> (Co_p, 9*Ci_p) matmul layout matching im2col rows."""
    co, ci = int(w_oihw.shape[0]), int(w_oihw.shape[1])
    wp = jnp.pad(w_oihw.astype(jnp.float32),
                 ((0, co_p - co), (0, ci_p - ci), (0, 0), (0, 0)))
    # (O, ky, kx, I) -> column index = (ky*3 + kx) * Ci_p + ci
    return jnp.transpose(wp, (0, 2, 3, 1)).reshape(co_p, 9 * ci_p).astype(dtype)


def _border_masks_np(H, W, n_imgs):
    """0/1 masks for the 9 taps ('same' zero pad), tiled per stacked image."""
    hw = H * W
    p = np.arange(hw)
    yy, xx = p // W, p % W
    rows = []
    for dy in (-1, 0, 1):
        for dx in (-1, 0, 1):
            m = np.ones(hw, np.bool_)
            if dy < 0:
                m &= yy >= 1
            if dy > 0:
                m &= yy <= H - 2
            if dx < 0:
                m &= xx >= 1
            if dx > 0:
                m &= xx <= W - 2
            rows.append(m)
    masks = np.stack(rows).astype(np.float32)                 # (9, hw)
    return np.tile(masks, (1, n_imgs)).reshape(9, 1, n_imgs * hw)


def _pick_images_per_step(n, hw, lane_cap=8192):
    """Largest divisor of n whose stacked lane extent stays modest."""
    nb = 1
    for d in range(1, n + 1):
        if n % d == 0 and d * hw <= lane_cap:
            nb = d
    return nb


def _pick_vmem_limit_bytes():
    """~3/4 of physical VMEM: ~96 MiB on v5e/v6e, ~48 MiB on v7x."""
    try:
        info = pltpu.get_tpu_info()
        cap = getattr(info, "vmem_capacity_bytes", None) or \
            getattr(info, "vmem_bytes", None)
        if cap:
            return int(min(cap * 3 // 4, 100 * 1024 * 1024))
    except Exception:
        pass
    return 48 * 1024 * 1024


# ---------------------------------------------------------------------------
# DecoderBlock factory: precompute weight matrices once, return forward(x,skip)
# ---------------------------------------------------------------------------
def make_decoder_block(w_deconv_oihw, w_conv_oihw, negative_slope=0.1,
                       mxu_dtype=jnp.bfloat16, images_per_step=None):
    """DecoderBlock (deconv_type='up', skip given, no norm). NCHW in / NCHW out."""
    out_ch, in_ch = int(w_deconv_oihw.shape[0]), int(w_deconv_oihw.shape[1])
    skip_ch = int(w_conv_oihw.shape[1]) - out_ch

    # Channel pads: multiples of 16 keep bf16 (16,128) sublane tiles aligned
    # through the in-kernel concatenations (16 is also a multiple of the f32 8).
    pad = 8 if mxu_dtype == jnp.float32 else 16
    cin_p = _round_up(in_ch, pad)
    cs_p = _round_up(skip_ch, pad)
    cout_p = _round_up(out_ch, pad)

    # Weight matrices computed ONCE (not per forward call).  conv2's weight is
    # pre-concatenated along K: [deconv-half | skip-half].
    w1_mat = _weight_to_mat(w_deconv_oihw, cout_p, cin_p, mxu_dtype)
    w2_mat = jnp.concatenate(
        [_weight_to_mat(w_conv_oihw[:, :out_ch], cout_p, cout_p, mxu_dtype),
         _weight_to_mat(w_conv_oihw[:, out_ch:], cout_p, cs_p, mxu_dtype)],
        axis=1)                                  # (cout_p, 9*(cout_p + cs_p))

    vmem_limit = _pick_vmem_limit_bytes()

    def forward(x_nchw, skip_nchw):
        n, _, h, w = x_nchw.shape
        _, _, H, W = skip_nchw.shape
        hw_out = H * W
        f32 = jnp.float32

        # --- nearest-neighbour upsample (PyTorch floor rule), linear cost ----
        row = np.arange(H) * h // H
        col = np.arange(W) * w // W
        up = jnp.take(jnp.take(x_nchw.astype(f32), row, axis=2), col, axis=3)

        # --- pad channels, flatten spatial, stack NB images along lanes ------
        nb = images_per_step or _pick_images_per_step(n, hw_out)
        assert n % nb == 0, (n, nb)
        g = n // nb
        lanes = nb * hw_out

        def stack(a_nchw, c_pad):
            c = a_nchw.shape[1]
            a = jnp.pad(a_nchw.astype(f32),
                        ((0, 0), (0, c_pad - c), (0, 0), (0, 0)))
            a = a.reshape(g, nb, c_pad, hw_out)
            return jnp.transpose(a, (0, 2, 1, 3)).reshape(g, c_pad, lanes)

        up_stk = stack(up, cin_p)
        skip_stk = stack(skip_nchw, cs_p)

        # Border masks are built from static shapes with numpy -> baked as
        # compile-time constants (computed once per compilation, not per call).
        masks = jnp.asarray(_border_masks_np(H, W, nb))

        kernel = functools.partial(
            _decoder_block_kernel, img_w=W, lanes=lanes,
            neg_slope=negative_slope, n_out=out_ch, mxu_dtype=mxu_dtype)

        # masks / w1 / w2 are grid-invariant (constant block index), so the
        # pipeline only fetches them once.
        out_stk = pl.pallas_call(
            kernel,
            out_shape=jax.ShapeDtypeStruct((g, out_ch, lanes), x_nchw.dtype),
            grid=(g,),
            in_specs=[
                pl.BlockSpec((1, cin_p, lanes), lambda i: (i, 0, 0)),
                pl.BlockSpec((1, cs_p, lanes), lambda i: (i, 0, 0)),
                pl.BlockSpec((9, 1, lanes), lambda i: (0, 0, 0)),
                pl.BlockSpec((cout_p, 9 * cin_p), lambda i: (0, 0)),
                pl.BlockSpec((cout_p, 9 * (cout_p + cs_p)), lambda i: (0, 0)),
            ],
            out_specs=pl.BlockSpec((1, out_ch, lanes), lambda i: (i, 0, 0)),
            compiler_params=pltpu.CompilerParams(
                dimension_semantics=("parallel",),
                vmem_limit_bytes=vmem_limit),
        )(up_stk, skip_stk, masks, w1_mat, w2_mat)

        # Unstack lanes back to NCHW.
        out = out_stk.reshape(g, out_ch, nb, hw_out)
        out = jnp.transpose(out, (0, 2, 1, 3)).reshape(n, out_ch, H, W)
        return out

    return forward


# ---------------------------------------------------------------------------
# Pure-JAX f32 reference (for correctness check)
# ---------------------------------------------------------------------------
def _ref_decoder_block(x, skip, w_deconv, w_conv, negative_slope=0.1):
    _, _, h, w = x.shape
    _, _, H, W = skip.shape
    row = (jnp.arange(H) * h) // H
    col = (jnp.arange(W) * w) // W
    up = x[:, :, row][:, :, :, col]

    def conv_lrelu(inp, w_oihw):
        y = jax.lax.conv_general_dilated(
            inp, w_oihw, window_strides=(1, 1), padding="SAME",
            dimension_numbers=("NCHW", "OIHW", "NCHW"))
        return jnp.where(y >= 0, y, negative_slope * y)

    deconv = conv_lrelu(up, w_deconv)
    concat = jnp.concatenate([deconv, skip], axis=1)
    return conv_lrelu(concat, w_conv)


if __name__ == "__main__":
    # Small shapes consistent with the module:
    #   x    : N x in_channels   x h x w   (low-res decoder feature)
    #   skip : N x skip_channels x H x W   (H = 2h, W = 2w skip feature)
    N = 2
    in_channels = 8
    skip_channels = 4
    out_channels = 8
    h, w = 8, 8
    H, W = 16, 16

    key = jax.random.PRNGKey(0)
    k_x, k_skip, k_w1, k_w2 = jax.random.split(key, 4)

    x = jax.random.normal(k_x, (N, in_channels, h, w), dtype=jnp.float32)
    skip = jax.random.normal(k_skip, (N, skip_channels, H, W), dtype=jnp.float32)

    # PyTorch-layout (O, I, kH, kW) weights; bias=False in the module.
    w_deconv = 0.1 * jax.random.normal(
        k_w1, (out_channels, in_channels, 3, 3), dtype=jnp.float32)
    w_conv = 0.1 * jax.random.normal(
        k_w2, (out_channels, out_channels + skip_channels, 3, 3),
        dtype=jnp.float32)

    fwd = jax.jit(make_decoder_block(w_deconv, w_conv, negative_slope=0.1))
    out = jax.block_until_ready(fwd(x, skip))
    assert out.shape == (N, out_channels, H, W), out.shape

    ref = _ref_decoder_block(x, skip, w_deconv, w_conv, negative_slope=0.1)
    err = float(jnp.max(jnp.abs(out - ref)))
    # bf16 MXU operands with f32 accumulation: allow a small numeric delta.
    assert err < 7.5e-2, err

    print("KERNEL_OK")
</pallas_src>

<mosaic_0001>
module attributes {stable_mosaic.version = 11 : i64} {
  func.func @_decoder_block_kernel(%arg0: i32, %arg1: memref<1x16x512xf32, #tpu.memory_space<vmem>>, %arg2: memref<1x16x512xf32, #tpu.memory_space<vmem>>, %arg3: memref<9x1x512xf32, #tpu.memory_space<vmem>>, %arg4: memref<16x144xbf16, #tpu.memory_space<vmem>>, %arg5: memref<16x288xbf16, #tpu.memory_space<vmem>>, %arg6: memref<1x8x512xf32, #tpu.memory_space<vmem>>) attributes {dimension_semantics = [#tpu.dimension_semantics<parallel>], iteration_bounds = array<i64: 1>, scalar_prefetch = 0 : i64, scratch_operands = 0 : i64, tpu.core_type = #tpu.core_type<tc>, window_params = [{transform_indices = @transform_0, window_bounds = array<i64: 1, 16, 512>}, {transform_indices = @transform_1, window_bounds = array<i64: 1, 16, 512>}, {pipeline_mode = #tpu.pipeline_mode<synchronous>, transform_indices = @transform_2, window_bounds = array<i64: 9, 1, 512>}, {pipeline_mode = #tpu.pipeline_mode<synchronous>, transform_indices = @transform_3, window_bounds = array<i64: 16, 144>}, {pipeline_mode = #tpu.pipeline_mode<synchronous>, transform_indices = @transform_4, window_bounds = array<i64: 16, 288>}, {transform_indices = @transform_5, window_bounds = array<i64: 1, 8, 512>}]} {
    %c0 = arith.constant 0 : index
    %c0_0 = arith.constant 0 : index
    %c0_1 = arith.constant 0 : index
    %0 = vector.load %arg3[%c0, %c0_0, %c0_1] : memref<9x1x512xf32, #tpu.memory_space<vmem>>, vector<9x1x512xf32>
    %c0_2 = arith.constant 0 : index
    %c0_3 = arith.constant 0 : index
    %1 = vector.load %arg4[%c0_2, %c0_3] : memref<16x144xbf16, #tpu.memory_space<vmem>>, vector<16x144xbf16>
    %c0_4 = arith.constant 0 : index
    %c0_5 = arith.constant 0 : index
    %c0_6 = arith.constant 0 : index
    %2 = vector.load %arg1[%c0_4, %c0_5, %c0_6] : memref<1x16x512xf32, #tpu.memory_space<vmem>>, vector<1x16x512xf32>
    %3 = vector.shape_cast %2 : vector<1x16x512xf32> to vector<16x512xf32>
    %c17_i32 = arith.constant 17 : i32
    %4 = tpu.dynamic_rotate %3 by %c17_i32 dim 1 : vector<16x512xf32>, i32 -> vector<16x512xf32>
    %5 = vector.extract_strided_slice %0 {offsets = [0, 0, 0], sizes = [1, 1, 512], strides = [1, 1, 1]} : vector<9x1x512xf32> to vector<1x1x512xf32>
    %6 = vector.shape_cast %5 : vector<1x1x512xf32> to vector<1x512xf32>
    %7 = vector.broadcast %6 : vector<1x512xf32> to vector<16x512xf32>
    %8 = arith.mulf %4, %7 : vector<16x512xf32>
    %9 = arith.truncf %8 : vector<16x512xf32> to vector<16x512xbf16>
    %c16_i32 = arith.constant 16 : i32
    %10 = tpu.dynamic_rotate %3 by %c16_i32 dim 1 : vector<16x512xf32>, i32 -> vector<16x512xf32>
    %11 = vector.extract_strided_slice %0 {offsets = [1, 0, 0], sizes = [1, 1, 512], strides = [1, 1, 1]} : vector<9x1x512xf32> to vector<1x1x512xf32>
    %12 = vector.shape_cast %11 : vector<1x1x512xf32> to vector<1x512xf32>
    %13 = vector.broadcast %12 : vector<1x512xf32> to vector<16x512xf32>
    %14 = arith.mulf %10, %13 : vector<16x512xf32>
    %15 = arith.truncf %14 : vector<16x512xf32> to vector<16x512xbf16>
    %c15_i32 = arith.constant 15 : i32
    %16 = tpu.dynamic_rotate %3 by %c15_i32 dim 1 : vector<16x512xf32>, i32 -> vector<16x512xf32>
    %17 = vector.extract_strided_slice %0 {offsets = [2, 0, 0], sizes = [1, 1, 512], strides = [1, 1, 1]} : vector<9x1x512xf32> to vector<1x1x512xf32>
    %18 = vector.shape_cast %17 : vector<1x1x512xf32> to vector<1x512xf32>
    %19 = vector.broadcast %18 : vector<1x512xf32> to vector<16x512xf32>
    %20 = arith.mulf %16, %19 : vector<16x512xf32>
    %21 = arith.truncf %20 : vector<16x512xf32> to vector<16x512xbf16>
    %c1_i32 = arith.constant 1 : i32
    %22 = tpu.dynamic_rotate %3 by %c1_i32 dim 1 : vector<16x512xf32>, i32 -> vector<16x512xf32>
    %23 = vector.extract_strided_slice %0 {offsets = [3, 0, 0], sizes = [1, 1, 512], strides = [1, 1, 1]} : vector<9x1x512xf32> to vector<1x1x512xf32>
    %24 = vector.shape_cast %23 : vector<1x1x512xf32> to vector<1x512xf32>
    %25 = vector.broadcast %24 : vector<1x512xf32> to vector<16x512xf32>
    %26 = arith.mulf %22, %25 : vector<16x512xf32>
    %27 = arith.truncf %26 : vector<16x512xf32> to vector<16x512xbf16>
    %28 = arith.truncf %3 : vector<16x512xf32> to vector<16x512xbf16>
    %c511_i32 = arith.constant 511 : i32
    %29 = tpu.dynamic_rotate %3 by %c511_i32 dim 1 : vector<16x512xf32>, i32 -> vector<16x512xf32>
    %30 = vector.extract_strided_slice %0 {offsets = [5, 0, 0], sizes = [1, 1, 512], strides = [1, 1, 1]} : vector<9x1x512xf32> to vector<1x1x512xf32>
    %31 = vector.shape_cast %30 : vector<1x1x512xf32> to vector<1x512xf32>
    %32 = vector.broadcast %31 : vector<1x512xf32> to vector<16x512xf32>
    %33 = arith.mulf %29, %32 : vector<16x512xf32>
    %34 = arith.truncf %33 : vector<16x512xf32> to vector<16x512xbf16>
    %c497_i32 = arith.constant 497 : i32
    %35 = tpu.dynamic_rotate %3 by %c497_i32 dim 1 : vector<16x512xf32>, i32 -> vector<16x512xf32>
    %36 = vector.extract_strided_slice %0 {offsets = [6, 0, 0], sizes = [1, 1, 512], strides = [1, 1, 1]} : vector<9x1x512xf32> to vector<1x1x512xf32>
    %37 = vector.shape_cast %36 : vector<1x1x512xf32> to vector<1x512xf32>
    %38 = vector.broadcast %37 : vector<1x512xf32> to vector<16x512xf32>
    %39 = arith.mulf %35, %38 : vector<16x512xf32>
    %40 = arith.truncf %39 : vector<16x512xf32> to vector<16x512xbf16>
    %c496_i32 = arith.constant 496 : i32
    %41 = tpu.dynamic_rotate %3 by %c496_i32 dim 1 : vector<16x512xf32>, i32 -> vector<16x512xf32>
    %42 = vector.extract_strided_slice %0 {offsets = [7, 0, 0], sizes = [1, 1, 512], strides = [1, 1, 1]} : vector<9x1x512xf32> to vector<1x1x512xf32>
    %43 = vector.shape_cast %42 : vector<1x1x512xf32> to vector<1x512xf32>
    %44 = vector.broadcast %43 : vector<1x512xf32> to vector<16x512xf32>
    %45 = arith.mulf %41, %44 : vector<16x512xf32>
    %46 = arith.truncf %45 : vector<16x512xf32> to vector<16x512xbf16>
    %c495_i32 = arith.constant 495 : i32
    %47 = tpu.dynamic_rotate %3 by %c495_i32 dim 1 : vector<16x512xf32>, i32 -> vector<16x512xf32>
    %48 = vector.extract_strided_slice %0 {offsets = [8, 0, 0], sizes = [1, 1, 512], strides = [1, 1, 1]} : vector<9x1x512xf32> to vector<1x1x512xf32>
    %49 = vector.shape_cast %48 : vector<1x1x512xf32> to vector<1x512xf32>
    %50 = vector.broadcast %49 : vector<1x512xf32> to vector<16x512xf32>
    %51 = arith.mulf %47, %50 : vector<16x512xf32>
    %52 = arith.truncf %51 : vector<16x512xf32> to vector<16x512xbf16>
    %53 = tpu.concatenate %9, %15, %21, %27, %28, %34, %40, %46, %52 in 0 : vector<16x512xbf16>, vector<16x512xbf16>, vector<16x512xbf16>, vector<16x512xbf16>, vector<16x512xbf16>, vector<16x512xbf16>, vector<16x512xbf16>, vector<16x512xbf16>, vector<16x512xbf16> -> vector<144x512xbf16>
    %cst = arith.constant dense<0.000000e+00> : vector<16x512xf32>
    %54 = tpu.matmul %1, %53, %cst {dimension_numbers = #tpu.dot_dimension_numbers<[1], [0], [0], [1], [0, 0, 1, 1], [], []>} : vector<16x144xbf16>, vector<144x512xbf16>, vector<16x512xf32> -> vector<16x512xf32>
    %cst_7 = arith.constant 0.000000e+00 : f32
    %55 = vector.broadcast %cst_7 : f32 to vector<16x512xf32>
    %56 = arith.cmpf oge, %54, %55 : vector<16x512xf32>
    %cst_8 = arith.constant 1.000000e-01 : f32
    %57 = vector.broadcast %cst_8 : f32 to vector<16x512xf32>
    %58 = arith.mulf %57, %54 : vector<16x512xf32>
    %59 = arith.select %56, %54, %58 : vector<16x512xi1>, vector<16x512xf32>
    %c17_i32_9 = arith.constant 17 : i32
    %60 = tpu.dynamic_rotate %59 by %c17_i32_9 dim 1 : vector<16x512xf32>, i32 -> vector<16x512xf32>
    %61 = vector.extract_strided_slice %0 {offsets = [0, 0, 0], sizes = [1, 1, 512], strides = [1, 1, 1]} : vector<9x1x512xf32> to vector<1x1x512xf32>
    %62 = vector.shape_cast %61 : vector<1x1x512xf32> to vector<1x512xf32>
    %63 = vector.broadcast %62 : vector<1x512xf32> to vector<16x512xf32>
    %64 = arith.mulf %60, %63 : vector<16x512xf32>
    %65 = arith.truncf %64 : vector<16x512xf32> to vector<16x512xbf16>
    %c16_i32_10 = arith.constant 16 : i32
    %66 = tpu.dynamic_rotate %59 by %c16_i32_10 dim 1 : vector<16x512xf32>, i32 -> vector<16x512xf32>
    %67 = vector.extract_strided_slice %0 {offsets = [1, 0, 0], sizes = [1, 1, 512], strides = [1, 1, 1]} : vector<9x1x512xf32> to vector<1x1x512xf32>
    %68 = vector.shape_cast %67 : vector<1x1x512xf32> to vector<1x512xf32>
    %69 = vector.broadcast %68 : vector<1x512xf32> to vector<16x512xf32>
    %70 = arith.mulf %66, %69 : vector<16x512xf32>
    %71 = arith.truncf %70 : vector<16x512xf32> to vector<16x512xbf16>
    %c15_i32_11 = arith.constant 15 : i32
    %72 = tpu.dynamic_rotate %59 by %c15_i32_11 dim 1 : vector<16x512xf32>, i32 -> vector<16x512xf32>
    %73 = vector.extract_strided_slice %0 {offsets = [2, 0, 0], sizes = [1, 1, 512], strides = [1, 1, 1]} : vector<9x1x512xf32> to vector<1x1x512xf32>
    %74 = vector.shape_cast %73 : vector<1x1x512xf32> to vector<1x512xf32>
    %75 = vector.broadcast %74 : vector<1x512xf32> to vector<16x512xf32>
    %76 = arith.mulf %72, %75 : vector<16x512xf32>
    %77 = arith.truncf %76 : vector<16x512xf32> to vector<16x512xbf16>
    %c1_i32_12 = arith.constant 1 : i32
    %78 = tpu.dynamic_rotate %59 by %c1_i32_12 dim 1 : vector<16x512xf32>, i32 -> vector<16x512xf32>
    %79 = vector.extract_strided_slice %0 {offsets = [3, 0, 0], sizes = [1, 1, 512], strides = [1, 1, 1]} : vector<9x1x512xf32> to vector<1x1x512xf32>
    %80 = vector.shape_cast %79 : vector<1x1x512xf32> to vector<1x512xf32>
    %81 = vector.broadcast %80 : vector<1x512xf32> to vector<16x512xf32>
    %82 = arith.mulf %78, %81 : vector<16x512xf32>
    %83 = arith.truncf %82 : vector<16x512xf32> to vector<16x512xbf16>
    %84 = arith.truncf %59 : vector<16x512xf32> to vector<16x512xbf16>
    %c511_i32_13 = arith.constant 511 : i32
    %85 = tpu.dynamic_rotate %59 by %c511_i32_13 dim 1 : vector<16x512xf32>, i32 -> vector<16x512xf32>
    %86 = vector.extract_strided_slice %0 {offsets = [5, 0, 0], sizes = [1, 1, 512], strides = [1, 1, 1]} : vector<9x1x512xf32> to vector<1x1x512xf32>
    %87 = vector.shape_cast %86 : vector<1x1x512xf32> to vector<1x512xf32>
    %88 = vector.broadcast %87 : vector<1x512xf32> to vector<16x512xf32>
    %89 = arith.mulf %85, %88 : vector<16x512xf32>
    %90 = arith.truncf %89 : vector<16x512xf32> to vector<16x512xbf16>
    %c497_i32_14 = arith.constant 497 : i32
    %91 = tpu.dynamic_rotate %59 by %c497_i32_14 dim 1 : vector<16x512xf32>, i32 -> vector<16x512xf32>
    %92 = vector.extract_strided_slice %0 {offsets = [6, 0, 0], sizes = [1, 1, 512], strides = [1, 1, 1]} : vector<9x1x512xf32> to vector<1x1x512xf32>
    %93 = vector.shape_cast %92 : vector<1x1x512xf32> to vector<1x512xf32>
    %94 = vector.broadcast %93 : vector<1x512xf32> to vector<16x512xf32>
    %95 = arith.mulf %91, %94 : vector<16x512xf32>
    %96 = arith.truncf %95 : vector<16x512xf32> to vector<16x512xbf16>
    %c496_i32_15 = arith.constant 496 : i32
    %97 = tpu.dynamic_rotate %59 by %c496_i32_15 dim 1 : vector<16x512xf32>, i32 -> vector<16x512xf32>
    %98 = vector.extract_strided_slice %0 {offsets = [7, 0, 0], sizes = [1, 1, 512], strides = [1, 1, 1]} : vector<9x1x512xf32> to vector<1x1x512xf32>
    %99 = vector.shape_cast %98 : vector<1x1x512xf32> to vector<1x512xf32>
    %100 = vector.broadcast %99 : vector<1x512xf32> to vector<16x512xf32>
    %101 = arith.mulf %97, %100 : vector<16x512xf32>
    %102 = arith.truncf %101 : vector<16x512xf32> to vector<16x512xbf16>
    %c495_i32_16 = arith.constant 495 : i32
    %103 = tpu.dynamic_rotate %59 by %c495_i32_16 dim 1 : vector<16x512xf32>, i32 -> vector<16x512xf32>
    %104 = vector.extract_strided_slice %0 {offsets = [8, 0, 0], sizes = [1, 1, 512], strides = [1, 1, 1]} : vector<9x1x512xf32> to vector<1x1x512xf32>
    %105 = vector.shape_cast %104 : vector<1x1x512xf32> to vector<1x512xf32>
    %106 = vector.broadcast %105 : vector<1x512xf32> to vector<16x512xf32>
    %107 = arith.mulf %103, %106 : vector<16x512xf32>
    %108 = arith.truncf %107 : vector<16x512xf32> to vector<16x512xbf16>
    %109 = tpu.concatenate %65, %71, %77, %83, %84, %90, %96, %102, %108 in 0 : vector<16x512xbf16>, vector<16x512xbf16>, vector<16x512xbf16>, vector<16x512xbf16>, vector<16x512xbf16>, vector<16x512xbf16>, vector<16x512xbf16>, vector<16x512xbf16>, vector<16x512xbf16> -> vector<144x512xbf16>
    %c0_17 = arith.constant 0 : index
    %c0_18 = arith.constant 0 : index
    %c0_19 = arith.constant 0 : index
    %110 = vector.load %arg2[%c0_17, %c0_18, %c0_19] : memref<1x16x512xf32, #tpu.memory_space<vmem>>, vector<1x16x512xf32>
    %111 = vector.shape_cast %110 : vector<1x16x512xf32> to vector<16x512xf32>
    %c17_i32_20 = arith.constant 17 : i32
    %112 = tpu.dynamic_rotate %111 by %c17_i32_20 dim 1 : vector<16x512xf32>, i32 -> vector<16x512xf32>
    %113 = vector.extract_strided_slice %0 {offsets = [0, 0, 0], sizes = [1, 1, 512], strides = [1, 1, 1]} : vector<9x1x512xf32> to vector<1x1x512xf32>
    %114 = vector.shape_cast %113 : vector<1x1x512xf32> to vector<1x512xf32>
    %115 = vector.broadcast %114 : vector<1x512xf32> to vector<16x512xf32>
    %116 = arith.mulf %112, %115 : vector<16x512xf32>
    %117 = arith.truncf %116 : vector<16x512xf32> to vector<16x512xbf16>
    %c16_i32_21 = arith.constant 16 : i32
    %118 = tpu.dynamic_rotate %111 by %c16_i32_21 dim 1 : vector<16x512xf32>, i32 -> vector<16x512xf32>
    %119 = vector.extract_strided_slice %0 {offsets = [1, 0, 0], sizes = [1, 1, 512], strides = [1, 1, 1]} : vector<9x1x512xf32> to vector<1x1x512xf32>
    %120 = vector.shape_cast %119 : vector<1x1x512xf32> to vector<1x512xf32>
    %121 = vector.broadcast %120 : vector<1x512xf32> to vector<16x512xf32>
    %122 = arith.mulf %118, %121 : vector<16x512xf32>
    %123 = arith.truncf %122 : vector<16x512xf32> to vector<16x512xbf16>
    %c15_i32_22 = arith.constant 15 : i32
    %124 = tpu.dynamic_rotate %111 by %c15_i32_22 dim 1 : vector<16x512xf32>, i32 -> vector<16x512xf32>
    %125 = vector.extract_strided_slice %0 {offsets = [2, 0, 0], sizes = [1, 1, 512], strides = [1, 1, 1]} : vector<9x1x512xf32> to vector<1x1x512xf32>
    %126 = vector.shape_cast %125 : vector<1x1x512xf32> to vector<1x512xf32>
    %127 = vector.broadcast %126 : vector<1x512xf32> to vector<16x512xf32>
    %128 = arith.mulf %124, %127 : vector<16x512xf32>
    %129 = arith.truncf %128 : vector<16x512xf32> to vector<16x512xbf16>
    %c1_i32_23 = arith.constant 1 : i32
    %130 = tpu.dynamic_rotate %111 by %c1_i32_23 dim 1 : vector<16x512xf32>, i32 -> vector<16x512xf32>
    %131 = vector.extract_strided_slice %0 {offsets = [3, 0, 0], sizes = [1, 1, 512], strides = [1, 1, 1]} : vector<9x1x512xf32> to vector<1x1x512xf32>
    %132 = vector.shape_cast %131 : vector<1x1x512xf32> to vector<1x512xf32>
    %133 = vector.broadcast %132 : vector<1x512xf32> to vector<16x512xf32>
    %134 = arith.mulf %130, %133 : vector<16x512xf32>
    %135 = arith.truncf %134 : vector<16x512xf32> to vector<16x512xbf16>
    %136 = arith.truncf %111 : vector<16x512xf32> to vector<16x512xbf16>
    %c511_i32_24 = arith.constant 511 : i32
    %137 = tpu.dynamic_rotate %111 by %c511_i32_24 dim 1 : vector<16x512xf32>, i32 -> vector<16x512xf32>
    %138 = vector.extract_strided_slice %0 {offsets = [5, 0, 0], sizes = [1, 1, 512], strides = [1, 1, 1]} : vector<9x1x512xf32> to vector<1x1x512xf32>
    %139 = vector.shape_cast %138 : vector<1x1x512xf32> to vector<1x512xf32>
    %140 = vector.broadcast %139 : vector<1x512xf32> to vector<16x512xf32>
    %141 = arith.mulf %137, %140 : vector<16x512xf32>
    %142 = arith.truncf %141 : vector<16x512xf32> to vector<16x512xbf16>
    %c497_i32_25 = arith.constant 497 : i32
    %143 = tpu.dynamic_rotate %111 by %c497_i32_25 dim 1 : vector<16x512xf32>, i32 -> vector<16x512xf32>
    %144 = vector.extract_strided_slice %0 {offsets = [6, 0, 0], sizes = [1, 1, 512], strides = [1, 1, 1]} : vector<9x1x512xf32> to vector<1x1x512xf32>
    %145 = vector.shape_cast %144 : vector<1x1x512xf32> to vector<1x512xf32>
    %146 = vector.broadcast %145 : vector<1x512xf32> to vector<16x512xf32>
    %147 = arith.mulf %143, %146 : vector<16x512xf32>
    %148 = arith.truncf %147 : vector<16x512xf32> to vector<16x512xbf16>
    %c496_i32_26 = arith.constant 496 : i32
    %149 = tpu.dynamic_rotate %111 by %c496_i32_26 dim 1 : vector<16x512xf32>, i32 -> vector<16x512xf32>
    %150 = vector.extract_strided_slice %0 {offsets = [7, 0, 0], sizes = [1, 1, 512], strides = [1, 1, 1]} : vector<9x1x512xf32> to vector<1x1x512xf32>
    %151 = vector.shape_cast %150 : vector<1x1x512xf32> to vector<1x512xf32>
    %152 = vector.broadcast %151 : vector<1x512xf32> to vector<16x512xf32>
    %153 = arith.mulf %149, %152 : vector<16x512xf32>
    %154 = arith.truncf %153 : vector<16x512xf32> to vector<16x512xbf16>
    %c495_i32_27 = arith.constant 495 : i32
    %155 = tpu.dynamic_rotate %111 by %c495_i32_27 dim 1 : vector<16x512xf32>, i32 -> vector<16x512xf32>
    %156 = vector.extract_strided_slice %0 {offsets = [8, 0, 0], sizes = [1, 1, 512], strides = [1, 1, 1]} : vector<9x1x512xf32> to vector<1x1x512xf32>
    %157 = vector.shape_cast %156 : vector<1x1x512xf32> to vector<1x512xf32>
    %158 = vector.broadcast %157 : vector<1x512xf32> to vector<16x512xf32>
    %159 = arith.mulf %155, %158 : vector<16x512xf32>
    %160 = arith.truncf %159 : vector<16x512xf32> to vector<16x512xbf16>
    %161 = tpu.concatenate %117, %123, %129, %135, %136, %142, %148, %154, %160 in 0 : vector<16x512xbf16>, vector<16x512xbf16>, vector<16x512xbf16>, vector<16x512xbf16>, vector<16x512xbf16>, vector<16x512xbf16>, vector<16x512xbf16>, vector<16x512xbf16>, vector<16x512xbf16> -> vector<144x512xbf16>
    %162 = tpu.concatenate %109, %161 in 0 : vector<144x512xbf16>, vector<144x512xbf16> -> vector<288x512xbf16>
    %c0_28 = arith.constant 0 : index
    %c0_29 = arith.constant 0 : index
    %163 = vector.load %arg5[%c0_28, %c0_29] : memref<16x288xbf16, #tpu.memory_space<vmem>>, vector<16x288xbf16>
    %cst_30 = arith.constant dense<0.000000e+00> : vector<16x512xf32>
    %164 = tpu.matmul %163, %162, %cst_30 {dimension_numbers = #tpu.dot_dimension_numbers<[1], [0], [0], [1], [0, 0, 1, 1], [], []>} : vector<16x288xbf16>, vector<288x512xbf16>, vector<16x512xf32> -> vector<16x512xf32>
    %cst_31 = arith.constant 0.000000e+00 : f32
    %165 = vector.broadcast %cst_31 : f32 to vector<16x512xf32>
    %166 = arith.cmpf oge, %164, %165 : vector<16x512xf32>
    %cst_32 = arith.constant 1.000000e-01 : f32
    %167 = vector.broadcast %cst_32 : f32 to vector<16x512xf32>
    %168 = arith.mulf %167, %164 : vector<16x512xf32>
    %169 = arith.select %166, %164, %168 : vector<16x512xi1>, vector<16x512xf32>
    %170 = vector.extract_strided_slice %169 {offsets = [0, 0], sizes = [8, 512], strides = [1, 1]} : vector<16x512xf32> to vector<8x512xf32>
    %c0_33 = arith.constant 0 : index
    %c0_34 = arith.constant 0 : index
    %c0_35 = arith.constant 0 : index
    %171 = vector.load %arg6[%c0_33, %c0_34, %c0_35] : memref<1x8x512xf32, #tpu.memory_space<vmem>>, vector<1x8x512xf32>
    %172 = vector.shape_cast %171 : vector<1x8x512xf32> to vector<8x512xf32>
    %173 = vector.shape_cast %170 : vector<8x512xf32> to vector<1x8x512xf32>
    tpu.vector_store %arg6[%c0_33, %c0_34, %c0_35], %173 {strides = array<i32>} : memref<1x8x512xf32, #tpu.memory_space<vmem>>, vector<1x8x512xf32>,
    return
  }
  func.func @transform_0(%arg0: i32) -> (i32, i32, i32) {
    %c0_i32 = arith.constant 0 : i32
    %c0_i32_0 = arith.constant 0 : i32
    %c0_i32_1 = arith.constant 0 : i32
    return %arg0, %c0_i32, %c0_i32_0 : i32, i32, i32
  }
  func.func @transform_1(%arg0: i32) -> (i32, i32, i32) {
    %c0_i32 = arith.constant 0 : i32
    %c0_i32_0 = arith.constant 0 : i32
    %c0_i32_1 = arith.constant 0 : i32
    return %arg0, %c0_i32, %c0_i32_0 : i32, i32, i32
  }
  func.func @transform_2(%arg0: i32) -> (i32, i32, i32) {
    %c0_i32 = arith.constant 0 : i32
    %c0_i32_0 = arith.constant 0 : i32
    %c0_i32_1 = arith.constant 0 : i32
    %c0_i32_2 = arith.constant 0 : i32
    return %c0_i32, %c0_i32_0, %c0_i32_1 : i32, i32, i32
  }
  func.func @transform_3(%arg0: i32) -> (i32, i32) {
    %c0_i32 = arith.constant 0 : i32
    %c0_i32_0 = arith.constant 0 : i32
    %c0_i32_1 = arith.constant 0 : i32
    return %c0_i32, %c0_i32_0 : i32, i32
  }
  func.func @transform_4(%arg0: i32) -> (i32, i32) {
    %c0_i32 = arith.constant 0 : i32
    %c0_i32_0 = arith.constant 0 : i32
    %c0_i32_1 = arith.constant 0 : i32
    return %c0_i32, %c0_i32_0 : i32, i32
  }
  func.func @transform_5(%arg0: i32) -> (i32, i32, i32) {
    %c0_i32 = arith.constant 0 : i32
    %c0_i32_0 = arith.constant 0 : i32
    %c0_i32_1 = arith.constant 0 : i32
    return %arg0, %c0_i32, %c0_i32_0 : i32, i32, i32
  }
}

</mosaic_0001>

<bundles_post_ra>
// kernel: forward.1
= control target key start
LH: loop header
LB: loop body
LE: loop exit
PB: predicated region body
PF: predicated region fallthrough
CT: control target
= control target key end

     0   :  { %s1464_s22 = smov 112   ;;  %s1465_s10 = smov 113   ;;  %v55_v8 = vlaneseq  ;;  %vm518_vm1 = vcmask 130048   ;;  %s3159_s0 = inlined_call_operand.vmem [shape: f32[1,16,512], index: 0, kind: input, shape index: {}]   ;;  %s3160_s2 = inlined_call_operand.vmem [shape: f32[9,1,512], index: 2, kind: input, shape index: {}]   ;;  %s3161_s3 = inlined_call_operand.vmem [shape: bf16[16,144], index: 3, kind: input, shape index: {}]   ;;  %s3162_s1 = inlined_call_operand.vmem [shape: f32[1,16,512], index: 1, kind: input, shape index: {}]   ;;  %s3163_s4 = inlined_call_operand.vmem [shape: bf16[16,288], index: 4, kind: input, shape index: {}]   ;;  %s3164_s5 = inlined_call_operand.vmem [shape: f32[1,8,512], index: 5, kind: output, shape index: {}]  }
   0x1   :  { %v1506_v0 = vld [vmem:[%s3159_s0 + $0x10] sm:$0xff]  ;;  %v1511_v1 = vld [vmem:[%s3159_s0 + $0x8] sm:$0xff]  ;;  %v1534_v4 = vld [vmem:[%s3159_s0 + $0x20] sm:$0xff]  ;;  %s1467_s11 = smov 1   ;;  %s1468_s12 = smov 15  }
   0x2   :  { %401 = vrot.lane.b32.xlu1 %v1506_v0, %s1464_s22  ;;  %397 = vrot.lane.b32.xlu0 %v1511_v1, %s1464_s22  ;;  %v1520_v2 = vld [vmem:[%s3159_s0 + $0x30] sm:$0xff]  ;;  %v1525_v3 = vld [vmem:[%s3159_s0 + $0x28] sm:$0xff]  ;;  %s1469_s13 = smov 16   ;;  %s1470_s14 = smov 17   ;;  %v68_v9 = vshrl.u32 %v55_v8, 7  ;;  %v1655_v10 = vand.u32 127, %v55_v8 }
   0x3   :  { %v1539_v5 = vld [vmem:[%s3159_s0] sm:$0xff]  ;;  %v1548_v6 = vld [vmem:[%s3159_s0 + $0x38] sm:$0xff]  ;;  %s1471_s15 = smov 111   ;;  %v1715_v39 = vld [vmem:[%s3162_s1 + $0x28] sm:$0xff] }
   0x4   :  { %v1553_v7 = vld [vmem:[%s3159_s0 + $0x18] sm:$0xff]  ;;  %s1466_s0 = smov 127   ;;  %v1661_v11 = vsub.s32 1, %v68_v9  ;;  %vm409_vm0 = vcmp.lt.s32.totalorder %v1655_v10, 112  ;;  %v1451_v15 = vld [vmem:[%s3161_s3 + $0x4] ss:$8 sps:$4 sm:$0xff]  }
   0x5   :  { %v27_v12 = vld [vmem:[%s3160_s2 + $0x1c] sm:$0xf]  ;;  %v1677_v17 = vsub.s32 0, %v68_v9  ;;  %1433 = vmatprep.mubr.msk.bf16.mxu0 %vm518_vm1, %v1451_v15  ;;  %1434 = vmatprep.mubr.msk.bf16.mxu1 %vm518_vm1, %v1451_v15  ;;  %v1683_v22 = vsub.s32 3, %v68_v9  ;;  %v1694_v26 = vsub.s32 2, %v68_v9  ;;  %v1720_v40 = vld [vmem:[%s3162_s1 + $0x8] sm:$0xff] }
   0x6   :  { %403 = vrot.lane.b32.xlu1 %v1520_v2, %s1464_s22  ;;  %399 = vrot.lane.b32.xlu0 %v1525_v3, %s1464_s22  ;;  %v1675_v16 = vrot.slane %v27_v12, %v1661_v11  ;;  %v26_v49 = vld [vmem:[%s3160_s2 + $0x18] sm:$0xf]  ;;  %v1744_v54 = vld [vmem:[%s3162_s1 + $0x30] sm:$0xff]  ;;  %vm351_vm2 = vcmp.lt.s32.totalorder %v1655_v10, 113  ;;  %vm293_vm3 = vcmp.lt.s32.totalorder %v1655_v10, 127  ;;  %vm231_vm4 = vcmp.lt.s32.totalorder %v1655_v10, 1 }
   0x7   :  { %v1692_v25 = vrot.slane %v27_v12, %v1677_v17  ;;  %v1701_v32 = vrot.slane %v27_v12, %v1683_v22  ;;  %v1708_v35 = vrot.slane %v27_v12, %v1694_v26  ;;  %v1749_v55 = vld [vmem:[%s3162_s1 + $0x10] sm:$0xff]  ;;  %v1753_v56 = vrot.slane %v26_v49, %v1661_v11  ;;  %v1762_v59 = vld [vmem:[%s3162_s1 + $0x20] sm:$0xff] }
   0x8   :  { %v1771_v62 = vld [vmem:[%s3162_s1] sm:$0xff]  ;;  %v1776_v9 = vrot.slane %v26_v49, %v1677_v17  ;;  %vm173_vm5 = vcmp.lt.s32.totalorder %v1655_v10, 15  ;;  %vm115_vm6 = vcmp.lt.s32.totalorder %v1655_v10, 16  ;;  %vm57_vm7 = vcmp.lt.s32.totalorder %v1655_v10, 17 }
   0x9   :  { %vm467_vm8 = vcmp.lt.s32.totalorder %v1655_v10, 111  ;;  %vm1243_vm1 = vcmask 261120  }
   0xa   :  { %395 = vrot.lane.b32.xlu1 %v1534_v4, %s1464_s22  ;;  %393 = vrot.lane.b32.xlu0 %v1539_v5, %s1464_s22 }
   0xe   :  { %407 = vrot.lane.b32.xlu1 %v1548_v6, %s1464_s22  ;;  %405 = vrot.lane.b32.xlu0 %v1553_v7, %s1464_s22 }
  0x12   :  { %341 = vrot.lane.b32.xlu1 %v1525_v3, %s1465_s10  ;;  %339 = vrot.lane.b32.xlu0 %v1511_v1, %s1465_s10 }
  0x16   :  { %345 = vrot.lane.b32.xlu1 %v1520_v2, %s1465_s10  ;;  %343 = vrot.lane.b32.xlu0 %v1506_v0, %s1465_s10 }
  0x1a   :  { %337 = vrot.lane.b32.xlu1 %v1534_v4, %s1465_s10  ;;  %335 = vrot.lane.b32.xlu0 %v1539_v5, %s1465_s10 }
  0x1e   :  { %349 = vrot.lane.b32.xlu1 %v1548_v6, %s1465_s10  ;;  %347 = vrot.lane.b32.xlu0 %v1553_v7, %s1465_s10 }
  0x22   :  { %283 = vrot.lane.b32.xlu1 %v1525_v3, %s1466_s0  ;;  %281 = vrot.lane.b32.xlu0 %v1511_v1, %s1466_s0 }
  0x26   :  { %287 = vrot.lane.b32.xlu1 %v1520_v2, %s1466_s0  ;;  %285 = vrot.lane.b32.xlu0 %v1506_v0, %s1466_s0 }
  0x2a   :  { %279 = vrot.lane.b32.xlu1 %v1534_v4, %s1466_s0  ;;  %277 = vrot.lane.b32.xlu0 %v1539_v5, %s1466_s0 }
  0x2e   :  { %291 = vrot.lane.b32.xlu1 %v1548_v6, %s1466_s0  ;;  %289 = vrot.lane.b32.xlu0 %v1553_v7, %s1466_s0 }
  0x32   :  { %217 = vrot.lane.b32.xlu1 %v1534_v4, %s1467_s11  ;;  %215 = vrot.lane.b32.xlu0 %v1539_v5, %s1467_s11 }
  0x36   :  { %221 = vrot.lane.b32.xlu1 %v1525_v3, %s1467_s11  ;;  %219 = vrot.lane.b32.xlu0 %v1511_v1, %s1467_s11 }
  0x3a   :  { %229 = vrot.lane.b32.xlu1 %v1548_v6, %s1467_s11  ;;  %227 = vrot.lane.b32.xlu0 %v1553_v7, %s1467_s11 }
  0x3e   :  { %225 = vrot.lane.b32.xlu1 %v1520_v2, %s1467_s11  ;;  %223 = vrot.lane.b32.xlu0 %v1506_v0, %s1467_s11 }
  0x42   :  { %159 = vrot.lane.b32.xlu1 %v1534_v4, %s1468_s12  ;;  %157 = vrot.lane.b32.xlu0 %v1539_v5, %s1468_s12 }
  0x46   :  { %163 = vrot.lane.b32.xlu1 %v1525_v3, %s1468_s12  ;;  %161 = vrot.lane.b32.xlu0 %v1511_v1, %s1468_s12 }
  0x4a   :  { %171 = vrot.lane.b32.xlu1 %v1548_v6, %s1468_s12  ;;  %169 = vrot.lane.b32.xlu0 %v1553_v7, %s1468_s12 }
  0x4e   :  { %167 = vrot.lane.b32.xlu1 %v1520_v2, %s1468_s12  ;;  %165 = vrot.lane.b32.xlu0 %v1506_v0, %s1468_s12 }
  0x52   :  { %101 = vrot.lane.b32.xlu1 %v1534_v4, %s1469_s13  ;;  %99 = vrot.lane.b32.xlu0 %v1539_v5, %s1469_s13 }
  0x56   :  { %105 = vrot.lane.b32.xlu1 %v1525_v3, %s1469_s13  ;;  %103 = vrot.lane.b32.xlu0 %v1511_v1, %s1469_s13 }
  0x5a   :  { %113 = vrot.lane.b32.xlu1 %v1548_v6, %s1469_s13  ;;  %111 = vrot.lane.b32.xlu0 %v1553_v7, %s1469_s13 }
  0x5e   :  { %109 = vrot.lane.b32.xlu1 %v1520_v2, %s1469_s13  ;;  %107 = vrot.lane.b32.xlu0 %v1506_v0, %s1469_s13 }
  0x62   :  { %41 = vrot.lane.b32.xlu1 %v1534_v4, %s1470_s14  ;;  %39 = vrot.lane.b32.xlu0 %v1539_v5, %s1470_s14 }
  0x66   :  { %45 = vrot.lane.b32.xlu1 %v1525_v3, %s1470_s14  ;;  %43 = vrot.lane.b32.xlu0 %v1511_v1, %s1470_s14 }
  0x6a   :  { %53 = vrot.lane.b32.xlu1 %v1548_v6, %s1470_s14  ;;  %51 = vrot.lane.b32.xlu0 %v1553_v7, %s1470_s14 }
  0x6e   :  { %49 = vrot.lane.b32.xlu1 %v1520_v2, %s1470_s14  ;;  %47 = vrot.lane.b32.xlu0 %v1506_v0, %s1470_s14 }
  0x72   :  { %457 = vrot.lane.b32.xlu1 %v1525_v3, %s1471_s15  ;;  %455 = vrot.lane.b32.xlu0 %v1511_v1, %s1471_s15 }
  0x74   :  { %v402_v13 = vpop.permute.xlu1 %401  ;;  %v398_v14 = vpop.permute.xlu0 %397 }
  0x75   :  { %v412_v18 = vsel %vm409_vm0, %v398_v14, %v402_v13 }
  0x76   :  { %461 = vrot.lane.b32.xlu1 %v1520_v2, %s1471_s15  ;;  %459 = vrot.lane.b32.xlu0 %v1506_v0, %s1471_s15  ;;  %v440_v23 = vmul.f32 %v1675_v16, %v412_v18 }
  0x78   :  { %v404_v19 = vpop.permute.xlu1 %403  ;;  %v400_v20 = vpop.permute.xlu0 %399 }
  0x79   :  { %v413_v21 = vsel %vm409_vm0, %v400_v20, %v404_v19 }
  0x7a   :  { %453 = vrot.lane.b32.xlu1 %v1534_v4, %s1471_s15  ;;  %451 = vrot.lane.b32.xlu0 %v1539_v5, %s1471_s15  ;;  %v444_v24 = vmul.f32 %v1675_v16, %v413_v21  ;;  %v1789_v21 = vrot.slane %v26_v49, %v1694_v26 }
  0x7c   :  { %v396_v27 = vpop.permute.xlu1 %395  ;;  %v394_v28 = vpop.permute.xlu0 %393  ;;  %v448_v29 = vpack.c.bf16 %v444_v24, %v440_v23  ;;  %v1792_v23 = vrot.slane %v26_v49, %v1683_v22 }
  0x7d   :  { %v415_v30 = vsel %vm409_vm0, %v396_v27, %v400_v20  ;;  %v414_v31 = vsel %vm409_vm0, %v394_v28, %v398_v14 }
  0x7e   :  { %465 = vrot.lane.b32.xlu1 %v1548_v6, %s1471_s15  ;;  %522 = vmatprep.subr.bf16.mxu0 %v448_v29  ;;  %v439_v33 = vmul.f32 %v1692_v25, %v414_v31  ;;  %v443_v34 = vmul.f32 %v1692_v25, %v415_v30 }
  0x7f   :  { %463 = vrot.lane.b32.xlu0 %v1553_v7, %s1471_s15 }
  0x80   :  { %v408_v36 = vpop.permute.xlu1 %407  ;;  %v406_v37 = vpop.permute.xlu0 %405  ;;  %v447_v38 = vpack.c.bf16 %v443_v34, %v439_v33 }
  0x81   :  { %v411_v41 = vsel %vm409_vm0, %v404_v19, %v408_v36  ;;  %v410_v42 = vsel %vm409_vm0, %v402_v13, %v406_v37  ;;  %v416_v43 = vsel %vm409_vm0, %v406_v37, %v394_v28  ;;  %v417_v44 = vsel %vm409_vm0, %v408_v36, %v396_v27 }
  0x82   :  { %523 = vmatpush1.bf16.msra.mxu0 %v447_v38  ;;  %v442_v45 = vmul.f32 %v1701_v32, %v416_v43  ;;  %v446_v46 = vmul.f32 %v1701_v32, %v417_v44  ;;  %v441_v47 = vmul.f32 %v1708_v35, %v410_v42  ;;  %v445_v48 = vmul.f32 %v1708_v35, %v411_v41  ;;  %v25_v41 = vld [vmem:[%s3160_s2 + $0x14] sm:$0xf] }
  0x83   :  { %1194 = vrot.lane.b32.xlu1 %v1715_v39, %s1471_s15  ;;  %1192 = vrot.lane.b32.xlu0 %v1720_v40, %s1471_s15 }
  0x84   :  { %v342_v50 = vpop.permute.xlu1 %341  ;;  %v340_v51 = vpop.permute.xlu0 %339  ;;  %v450_v52 = vpack.c.bf16 %v446_v46, %v442_v45  ;;  %v449_v53 = vpack.c.bf16 %v445_v48, %v441_v47  ;;  %v1819_v46 = vrot.slane %v25_v41, %v1661_v11 }
  0x86   :  { %565 = vmatprep.subr.bf16.mxu1 %v450_v52 }
  0x87   :  { %566 = vmatpush1.bf16.msra.mxu1 %v449_v53  ;;  %1198 = vrot.lane.b32.xlu1 %v1744_v54, %s1471_s15  ;;  %v1832_v53 = vrot.slane %v25_v41, %v1677_v17 }
  0x88   :  { %v346_v57 = vpop.permute.xlu1 %345  ;;  %v344_v58 = vpop.permute.xlu0 %343  ;;  %1196 = vrot.lane.b32.xlu0 %v1749_v55, %s1471_s15 }
  0x89   :  { %v355_v60 = vsel %vm351_vm2, %v342_v50, %v346_v57  ;;  %v354_v61 = vsel %vm351_vm2, %v340_v51, %v344_v58 }
  0x8a   :  { %v386_v63 = vmul.f32 %v1753_v56, %v355_v60  ;;  %v382_v8 = vmul.f32 %v1753_v56, %v354_v61 }
  0x8b   :  { %1190 = vrot.lane.b32.xlu1 %v1762_v59, %s1471_s15 }
  0x8c   :  { %v338_v12 = vpop.permute.xlu1 %337  ;;  %v336_v13 = vpop.permute.xlu0 %335  ;;  %v390_v14 = vpack.c.bf16 %v386_v63, %v382_v8  ;;  %1188 = vrot.lane.b32.xlu0 %v1771_v62, %s1471_s15 }
  0x8d   :  { %v357_v15 = vsel %vm351_vm2, %v338_v12, %v342_v50  ;;  %v356_v18 = vsel %vm351_vm2, %v336_v13, %v340_v51 }
  0x8e   :  { %v385_v19 = vmul.f32 %v1776_v9, %v357_v15  ;;  %v381_v20 = vmul.f32 %v1776_v9, %v356_v18  ;;  %524 = vmatprep.subr.bf16.mxu0 %v390_v14  ;;  %v1848_v14 = vrot.slane %v25_v41, %v1683_v22  ;;  %v274_v15 = vpack.c.bf16 %v1525_v3, %v1511_v1 }
  0x8f   :  { %1158 = vrot.lane.b32.xlu1 %v1715_v39, %s1464_s22 }
  0x90   :  { %v350_v24 = vpop.permute.xlu1 %349  ;;  %v348_v27 = vpop.permute.xlu0 %347  ;;  %v389_v28 = vpack.c.bf16 %v385_v19, %v381_v20  ;;  %1156 = vrot.lane.b32.xlu0 %v1720_v40, %s1464_s22 }
  0x91   :  { %v353_v29 = vsel %vm351_vm2, %v346_v57, %v350_v24  ;;  %v359_v30 = vsel %vm351_vm2, %v350_v24, %v338_v12  ;;  %v352_v31 = vsel %vm351_vm2, %v344_v58, %v348_v27  ;;  %v358_v33 = vsel %vm351_vm2, %v348_v27, %v336_v13 }
  0x92   :  { %v387_v34 = vmul.f32 %v1789_v21, %v353_v29  ;;  %v388_v36 = vmul.f32 %v1792_v23, %v359_v30  ;;  %v383_v37 = vmul.f32 %v1789_v21, %v352_v31  ;;  %v384_v38 = vmul.f32 %v1792_v23, %v358_v33  ;;  %525 = vmatpush1.bf16.msra.mxu0 %v389_v28  ;;  %v24_v31 = vld [vmem:[%s3160_s2 + $0xc] sm:$0xf] }
  0x93   :  { %1162 = vrot.lane.b32.xlu1 %v1744_v54, %s1464_s22  ;;  %v1845_v13 = vrot.slane %v25_v41, %v1694_v26  ;;  %v273_v24 = vpack.c.bf16 %v1534_v4, %v1539_v5  ;;  %v1881_v41 = vrot.slane %v24_v31, %v1661_v11 }
  0x94   :  { %v284_v42 = vpop.permute.xlu1 %283  ;;  %v282_v43 = vpop.permute.xlu0 %281  ;;  %v392_v44 = vpack.c.bf16 %v388_v36, %v384_v38  ;;  %v391_v45 = vpack.c.bf16 %v387_v34, %v383_v37  ;;  %1160 = vrot.lane.b32.xlu0 %v1749_v55, %s1464_s22  ;;  %v276_v38 = vpack.c.bf16 %v1548_v6, %v1553_v7 }
  0x96   :  { %567 = vmatprep.subr.bf16.mxu1 %v392_v44 }
  0x97   :  { %568 = vmatpush1.bf16.msra.mxu1 %v391_v45  ;;  %1154 = vrot.lane.b32.xlu1 %v1762_v59, %s1464_s22 }
  0x98   :  { %v288_v47 = vpop.permute.xlu1 %287  ;;  %v286_v48 = vpop.permute.xlu0 %285  ;;  %1152 = vrot.lane.b32.xlu0 %v1771_v62, %s1464_s22 }
  0x99   :  { %v297_v49 = vsel %vm293_vm3, %v284_v42, %v288_v47  ;;  %v296_v50 = vsel %vm293_vm3, %v282_v43, %v286_v48 }
  0x9a   :  { %v328_v51 = vmul.f32 %v1819_v46, %v297_v49  ;;  %v324_v52 = vmul.f32 %v1819_v46, %v296_v50 }
  0x9b   :  { %1122 = vrot.lane.b32.xlu1 %v1715_v39, %s1465_s10 }
  0x9c   :  { %v280_v57 = vpop.permute.xlu1 %279  ;;  %v278_v58 = vpop.permute.xlu0 %277  ;;  %v332_v60 = vpack.c.bf16 %v328_v51, %v324_v52  ;;  %1120 = vrot.lane.b32.xlu0 %v1720_v40, %s1465_s10 }
  0x9d   :  { %v299_v61 = vsel %vm293_vm3, %v280_v57, %v284_v42  ;;  %v298_v63 = vsel %vm293_vm3, %v278_v58, %v282_v43  ;;  %v275_v42 = vpack.c.bf16 %v1520_v2, %v1506_v0  ;;  %v1896_v0 = vrot.slane %v24_v31, %v1677_v17 }
  0x9e   :  { %v327_v8 = vmul.f32 %v1832_v53, %v299_v61  ;;  %v323_v12 = vmul.f32 %v1832_v53, %v298_v63  ;;  %526 = vmatprep.subr.bf16.mxu0 %v332_v60  ;;  %v1912_v60 = vrot.slane %v24_v31, %v1683_v22 }
  0x9f   :  { %1126 = vrot.lane.b32.xlu1 %v1744_v54, %s1465_s10 }
  0xa0   :  { %v292_v18 = vpop.permute.xlu1 %291  ;;  %v290_v19 = vpop.permute.xlu0 %289  ;;  %v331_v20 = vpack.c.bf16 %v327_v8, %v323_v12  ;;  %1124 = vrot.lane.b32.xlu0 %v1749_v55, %s1465_s10  ;;  %v1921_v12 = vld [vmem:[%s3162_s1 + $0x38] sm:$0xff] }
  0xa1   :  { %v295_v27 = vsel %vm293_vm3, %v288_v47, %v292_v18  ;;  %v301_v28 = vsel %vm293_vm3, %v292_v18, %v280_v57  ;;  %v294_v1 = vsel %vm293_vm3, %v286_v48, %v290_v19  ;;  %v300_v3 = vsel %vm293_vm3, %v290_v19, %v278_v58 }
  0xa2   :  { %v329_v29 = vmul.f32 %v1845_v13, %v295_v27  ;;  %v330_v30 = vmul.f32 %v1848_v14, %v301_v28  ;;  %v325_v4 = vmul.f32 %v1845_v13, %v294_v1  ;;  %v326_v5 = vmul.f32 %v1848_v14, %v300_v3  ;;  %527 = vmatpush1.bf16.msra.mxu0 %v331_v20 }
  0xa3   :  { %528 = vmatprep.subr.bf16.mxu0 %v274_v15  ;;  %1118 = vrot.lane.b32.xlu1 %v1762_v59, %s1465_s10  ;;  %v1909_v58 = vrot.slane %v24_v31, %v1694_v26 }
  0xa4   :  { %v218_v33 = vpop.permute.xlu1 %217  ;;  %v216_v34 = vpop.permute.xlu0 %215  ;;  %v334_v36 = vpack.c.bf16 %v330_v30, %v326_v5  ;;  %v333_v37 = vpack.c.bf16 %v329_v29, %v325_v4  ;;  %1116 = vrot.lane.b32.xlu0 %v1771_v62, %s1465_s10  ;;  %v23_v29 = vld [vmem:[%s3160_s2 + $0x8] sm:$0xf] }
  0xa6   :  { %569 = vmatprep.subr.bf16.mxu1 %v334_v36  ;;  %529 = vmatpush1.bf16.msra.mxu0 %v273_v24  ;;  %v1934_v24 = vld [vmem:[%s3162_s1 + $0x18] sm:$0xff] }
  0xa7   :  { %570 = vmatpush1.bf16.msra.mxu1 %v333_v37  ;;  %1086 = vrot.lane.b32.xlu1 %v1715_v39, %s1466_s0 }
  0xa8   :  { %v222_v43 = vpop.permute.xlu1 %221  ;;  %v220_v44 = vpop.permute.xlu0 %219  ;;  %571 = vmatprep.subr.bf16.mxu1 %v276_v38  ;;  %1084 = vrot.lane.b32.xlu0 %v1720_v40, %s1466_s0 }
  0xa9   :  { %v237_v6 = vsel %vm231_vm4, %v218_v33, %v222_v43  ;;  %v236_v7 = vsel %vm231_vm4, %v216_v34, %v220_v44 }
  0xaa   :  { %v266_v45 = vmul.f32 %v1881_v41, %v237_v6  ;;  %v262_v47 = vmul.f32 %v1881_v41, %v236_v7 }
  0xab   :  { %572 = vmatpush1.bf16.msra.mxu1 %v275_v42  ;;  %1090 = vrot.lane.b32.xlu1 %v1744_v54, %s1466_s0 }
  0xac   :  { %v230_v2 = vpop.permute.xlu1 %229  ;;  %v228_v48 = vpop.permute.xlu0 %227  ;;  %v270_v49 = vpack.c.bf16 %v266_v45, %v262_v47  ;;  %1088 = vrot.lane.b32.xlu0 %v1749_v55, %s1466_s0 }
  0xad   :  { %v239_v50 = vsel %vm231_vm4, %v230_v2, %v218_v33  ;;  %v238_v51 = vsel %vm231_vm4, %v228_v48, %v216_v34  ;;  %v1949_v33 = vrot.slane %v23_v29, %v1661_v11 }
  0xae   :  { %v265_v52 = vmul.f32 %v1896_v0, %v239_v50  ;;  %v261_v57 = vmul.f32 %v1896_v0, %v238_v51  ;;  %530 = vmatprep.subr.bf16.mxu0 %v270_v49  ;;  %v1975_v50 = vrot.slane %v23_v29, %v1694_v26  ;;  %v1978_v51 = vrot.slane %v23_v29, %v1683_v22 }
  0xaf   :  { %1082 = vrot.lane.b32.xlu1 %v1762_v59, %s1466_s0 }
  0xb0   :  { %v226_v61 = vpop.permute.xlu1 %225  ;;  %v224_v63 = vpop.permute.xlu0 %223  ;;  %v269_v8 = vpack.c.bf16 %v265_v52, %v261_v57  ;;  %1080 = vrot.lane.b32.xlu0 %v1771_v62, %s1466_s0 }
  0xb1   :  { %v233_v15 = vsel %vm231_vm4, %v226_v61, %v230_v2  ;;  %v235_v18 = vsel %vm231_vm4, %v222_v43, %v226_v61  ;;  %v232_v19 = vsel %vm231_vm4, %v224_v63, %v228_v48  ;;  %v234_v20 = vsel %vm231_vm4, %v220_v44, %v224_v63 }
  0xb2   :  { %v267_v27 = vmul.f32 %v1909_v58, %v235_v18  ;;  %v268_v28 = vmul.f32 %v1912_v60, %v233_v15  ;;  %v263_v1 = vmul.f32 %v1909_v58, %v234_v20  ;;  %v264_v3 = vmul.f32 %v1912_v60, %v232_v19  ;;  %531 = vmatpush1.bf16.msra.mxu0 %v269_v8 }
  0xb3   :  { %1130 = vrot.lane.b32.xlu1 %v1921_v12, %s1465_s10  ;;  %v1962_v44 = vrot.slane %v23_v29, %v1677_v17 }
  0xb4   :  { %v160_v30 = vpop.permute.xlu1 %159  ;;  %v158_v4 = vpop.permute.xlu0 %157  ;;  %v272_v5 = vpack.c.bf16 %v268_v28, %v264_v3  ;;  %v271_v31 = vpack.c.bf16 %v267_v27, %v263_v1  ;;  %1128 = vrot.lane.b32.xlu0 %v1934_v24, %s1465_s10  ;;  %v22_v1 = vld [vmem:[%s3160_s2 + $0x4] sm:$0xf] }
  0xb6   :  { %573 = vmatprep.subr.bf16.mxu1 %v272_v5  ;;  %v2005_v5 = vrot.slane %v22_v1, %v1661_v11 }
  0xb7   :  { %574 = vmatpush1.bf16.msra.mxu1 %v271_v31  ;;  %1042 = vrot.lane.b32.xlu1 %v1762_v59, %s1467_s11 }
  0xb8   :  { %v164_v34 = vpop.permute.xlu1 %163  ;;  %v162_v36 = vpop.permute.xlu0 %161  ;;  %1040 = vrot.lane.b32.xlu0 %v1771_v62, %s1467_s11  ;;  %3257 = vst [vmem:[#allocation2_spill] sm:$0xff] %v2005_v5 }
  0xb9   :  { %v179_v37 = vsel %vm173_vm5, %v160_v30, %v164_v34  ;;  %v178_v38 = vsel %vm173_vm5, %v158_v4, %v162_v36 }
  0xba   :  { %v208_v42 = vmul.f32 %v1949_v33, %v179_v37  ;;  %v204_v43 = vmul.f32 %v1949_v33, %v178_v38 }
  0xbb   :  { %1046 = vrot.lane.b32.xlu1 %v1715_v39, %s1467_s11 }
  0xbc   :  { %v172_v6 = vpop.permute.xlu1 %171  ;;  %v170_v7 = vpop.permute.xlu0 %169  ;;  %v212_v45 = vpack.c.bf16 %v208_v42, %v204_v43  ;;  %1044 = vrot.lane.b32.xlu0 %v1720_v40, %s1467_s11  ;;  %v2018_v43 = vrot.slane %v22_v1, %v1677_v17 }
  0xbd   :  { %v181_v47 = vsel %vm173_vm5, %v172_v6, %v160_v30  ;;  %v180_v2 = vsel %vm173_vm5, %v170_v7, %v158_v4 }
  0xbe   :  { %v207_v48 = vmul.f32 %v1962_v44, %v181_v47  ;;  %v203_v49 = vmul.f32 %v1962_v44, %v180_v2  ;;  %532 = vmatprep.subr.bf16.mxu0 %v212_v45  ;;  %3258 = vst [vmem:[#allocation3_spill] sm:$0xff] %v2018_v43 }
  0xbf   :  { %1094 = vrot.lane.b32.xlu1 %v1921_v12, %s1466_s0 }
  0xc0   :  { %v168_v52 = vpop.permute.xlu1 %167  ;;  %v166_v57 = vpop.permute.xlu0 %165  ;;  %v211_v61 = vpack.c.bf16 %v207_v48, %v203_v49  ;;  %1092 = vrot.lane.b32.xlu0 %v1934_v24, %s1466_s0 }
  0xc1   :  { %v175_v63 = vsel %vm173_vm5, %v168_v52, %v172_v6  ;;  %v177_v8 = vsel %vm173_vm5, %v164_v34, %v168_v52  ;;  %v174_v15 = vsel %vm173_vm5, %v166_v57, %v170_v7  ;;  %v176_v18 = vsel %vm173_vm5, %v162_v36, %v166_v57 }
  0xc2   :  { %v209_v19 = vmul.f32 %v1975_v50, %v177_v8  ;;  %v210_v20 = vmul.f32 %v1978_v51, %v175_v63  ;;  %v205_v27 = vmul.f32 %v1975_v50, %v176_v18  ;;  %v206_v28 = vmul.f32 %v1978_v51, %v174_v15  ;;  %533 = vmatpush1.bf16.msra.mxu0 %v211_v61 }
  0xc3   :  { %1054 = vrot.lane.b32.xlu1 %v1921_v12, %s1467_s11  ;;  %v2031_v52 = vrot.slane %v22_v1, %v1694_v26  ;;  %v2034_v57 = vrot.slane %v22_v1, %v1683_v22 }
  0xc4   :  { %v102_v3 = vpop.permute.xlu1 %101  ;;  %v100_v29 = vpop.permute.xlu0 %99  ;;  %v214_v30 = vpack.c.bf16 %v210_v20, %v206_v28  ;;  %v213_v4 = vpack.c.bf16 %v209_v19, %v205_v27  ;;  %1052 = vrot.lane.b32.xlu0 %v1934_v24, %s1467_s11 }
  0xc5   :  { %3259 = vst [vmem:[#allocation4_spill] sm:$0xff] %v2031_v52  ;;  %3260 = vst [vmem:[#allocation5_spill] sm:$0xff] %v2034_v57 }
  0xc6   :  { %575 = vmatprep.subr.bf16.mxu1 %v214_v30 }
  0xc7   :  { %576 = vmatpush1.bf16.msra.mxu1 %v213_v4  ;;  %1006 = vrot.lane.b32.xlu1 %v1762_v59, %s1468_s12 }
  0xc8   :  { %v106_v31 = vpop.permute.xlu1 %105  ;;  %v104_v34 = vpop.permute.xlu0 %103  ;;  %1004 = vrot.lane.b32.xlu0 %v1771_v62, %s1468_s12 }
  0xc9   :  { %v121_v36 = vsel %vm115_vm6, %v102_v3, %v106_v31  ;;  %v120_v37 = vsel %vm115_vm6, %v100_v29, %v104_v34 }
  0xca   :  { %v150_v38 = vmul.f32 %v2005_v5, %v121_v36  ;;  %v146_v42 = vmul.f32 %v2005_v5, %v120_v37 }
  0xcb   :  { %1010 = vrot.lane.b32.xlu1 %v1715_v39, %s1468_s12 }
  0xcc   :  { %v114_v6 = vpop.permute.xlu1 %113  ;;  %v112_v7 = vpop.permute.xlu0 %111  ;;  %v154_v45 = vpack.c.bf16 %v150_v38, %v146_v42  ;;  %1008 = vrot.lane.b32.xlu0 %v1720_v40, %s1468_s12 }
  0xcd   :  { %v123_v47 = vsel %vm115_vm6, %v114_v6, %v102_v3  ;;  %v122_v2 = vsel %vm115_vm6, %v112_v7, %v100_v29  ;;  %v21_v29 = vld [vmem:[%s3160_s2] sm:$0xf] }
  0xce   :  { %v149_v48 = vmul.f32 %v2018_v43, %v123_v47  ;;  %v145_v49 = vmul.f32 %v2018_v43, %v122_v2  ;;  %534 = vmatprep.subr.bf16.mxu0 %v154_v45  ;;  %v2061_v36 = vrot.slane %v21_v29, %v1661_v11  ;;  %v2074_v47 = vrot.slane %v21_v29, %v1677_v17 }
  0xcf   :  { %1018 = vrot.lane.b32.xlu1 %v1921_v12, %s1468_s12 }
  0xd0   :  { %v110_v61 = vpop.permute.xlu1 %109  ;;  %v108_v63 = vpop.permute.xlu0 %107  ;;  %v153_v8 = vpack.c.bf16 %v149_v48, %v145_v49  ;;  %1016 = vrot.lane.b32.xlu0 %v1934_v24, %s1468_s12  ;;  %3261 = vst [vmem:[#allocation6_spill] sm:$0xff] %v2061_v36  ;;  %3262 = vst [vmem:[#allocation7_spill] sm:$0xff] %v2074_v47 }
  0xd1   :  { %v117_v15 = vsel %vm115_vm6, %v110_v61, %v114_v6  ;;  %v119_v18 = vsel %vm115_vm6, %v106_v31, %v110_v61  ;;  %v116_v19 = vsel %vm115_vm6, %v108_v63, %v112_v7  ;;  %v118_v20 = vsel %vm115_vm6, %v104_v34, %v108_v63 }
  0xd2   :  { %v151_v27 = vmul.f32 %v2031_v52, %v119_v18  ;;  %v152_v28 = vmul.f32 %v2034_v57, %v117_v15  ;;  %v147_v1 = vmul.f32 %v2031_v52, %v118_v20  ;;  %v148_v3 = vmul.f32 %v2034_v57, %v116_v19  ;;  %535 = vmatpush1.bf16.msra.mxu0 %v153_v8 }
  0xd3   :  { %970 = vrot.lane.b32.xlu1 %v1762_v59, %s1469_s13  ;;  %v2087_v18 = vrot.slane %v21_v29, %v1694_v26 }
  0xd4   :  { %v42_v30 = vpop.permute.xlu1 %41  ;;  %v40_v4 = vpop.permute.xlu0 %39  ;;  %v156_v31 = vpack.c.bf16 %v152_v28, %v148_v3  ;;  %v155_v34 = vpack.c.bf16 %v151_v27, %v147_v1  ;;  %968 = vrot.lane.b32.xlu0 %v1771_v62, %s1469_s13 }
  0xd5   :  { %3263 = vst [vmem:[#allocation8_spill] sm:$0xff] %v2087_v18 }
  0xd6   :  { %577 = vmatprep.subr.bf16.mxu1 %v156_v31 }
  0xd7   :  { %578 = vmatpush1.bf16.msra.mxu1 %v155_v34  ;;  %974 = vrot.lane.b32.xlu1 %v1715_v39, %s1469_s13  ;;  %v28_v34 = vld [vmem:[%s3160_s2 + $0x20] sm:$0xf] }
  0xd8   :  { %v46_v37 = vpop.permute.xlu1 %45  ;;  %v44_v38 = vpop.permute.xlu0 %43  ;;  %972 = vrot.lane.b32.xlu0 %v1720_v40, %s1469_s13 }
  0xd9   :  { %v63_v42 = vsel %vm57_vm7, %v42_v30, %v46_v37  ;;  %v62_v6 = vsel %vm57_vm7, %v40_v4, %v44_v38 }
  0xda   :  { %v92_v7 = vmul.f32 %v2061_v36, %v63_v42  ;;  %v88_v45 = vmul.f32 %v2061_v36, %v62_v6 }
  0xdb   :  { %1050 = vrot.lane.b32.xlu1 %v1744_v54, %s1467_s11  ;;  %v2090_v54 = vrot.slane %v21_v29, %v1683_v22 }
  0xdc   :  { %v54_v2 = vpop.permute.xlu1 %53  ;;  %v52_v48 = vpop.permute.xlu0 %51  ;;  %v96_v49 = vpack.c.bf16 %v92_v7, %v88_v45  ;;  %1048 = vrot.lane.b32.xlu0 %v1749_v55, %s1467_s11  ;;  %v2117_v7 = vrot.slane %v28_v34, %v1661_v11 }
  0xdd   :  { %v65_v61 = vsel %vm57_vm7, %v54_v2, %v42_v30  ;;  %v64_v63 = vsel %vm57_vm7, %v52_v48, %v40_v4  ;;  %3264 = vst [vmem:[#allocation9_spill] sm:$0xff] %v2090_v54 }
  0xde   :  { %v91_v8 = vmul.f32 %v2074_v47, %v65_v61  ;;  %v87_v15 = vmul.f32 %v2074_v47, %v64_v63  ;;  %536 = vmatprep.subr.bf16.mxu0 %v96_v49  ;;  %3265 = vst [vmem:[#allocation10_spill] sm:$0xff] %v2117_v7  ;;  %v2130_v49 = vrot.slane %v28_v34, %v1677_v17 }
  0xdf   :  { %982 = vrot.lane.b32.xlu1 %v1921_v12, %s1469_s13  ;;  %v2142_v17 = vrot.slane %v28_v34, %v1683_v22 }
  0xe0   :  { %v50_v55 = vpop.permute.xlu1 %49  ;;  %v48_v19 = vpop.permute.xlu0 %47  ;;  %v95_v20 = vpack.c.bf16 %v91_v8, %v87_v15  ;;  %980 = vrot.lane.b32.xlu0 %v1934_v24, %s1469_s13  ;;  %3266 = vst [vmem:[#allocation11_spill] sm:$0xff] %v2130_v49 }
  0xe1   :  { %v59_v27 = vsel %vm57_vm7, %v50_v55, %v54_v2  ;;  %v61_v28 = vsel %vm57_vm7, %v46_v37, %v50_v55  ;;  %v58_v1 = vsel %vm57_vm7, %v48_v19, %v52_v48  ;;  %v60_v3 = vsel %vm57_vm7, %v44_v38, %v48_v19  ;;  %3268 = vst [vmem:[#allocation13_spill] sm:$0xff] %v2142_v17 }
  0xe2   :  { %v93_v29 = vmul.f32 %v2087_v18, %v61_v28  ;;  %v94_v30 = vmul.f32 %v2090_v54, %v59_v27  ;;  %v89_v4 = vmul.f32 %v2087_v18, %v60_v3  ;;  %v90_v31 = vmul.f32 %v2090_v54, %v58_v1  ;;  %537 = vmatpush1.bf16.msra.mxu0 %v95_v20 }
  0xe3   :  { %934 = vrot.lane.b32.xlu1 %v1762_v59, %s1470_s14  ;;  %v2139_v19 = vrot.slane %v28_v34, %v1694_v26 }
  0xe4   :  { %v458_v37 = vpop.permute.xlu1 %457  ;;  %v456_v42 = vpop.permute.xlu0 %455  ;;  %v98_v6 = vpack.c.bf16 %v94_v30, %v90_v31  ;;  %v97_v38 = vpack.c.bf16 %v93_v29, %v89_v4  ;;  %932 = vrot.lane.b32.xlu0 %v1771_v62, %s1470_s14  ;;  %v1449_v29 = vld [vmem:[%s3161_s3] ss:$8 sps:$4 sm:$0xff]  }
  0xe5   :  { %3267 = vst [vmem:[#allocation12_spill] sm:$0xff] %v2139_v19 }
  0xe6   :  { %579 = vmatprep.subr.bf16.mxu1 %v98_v6 }
  0xe7   :  { %580 = vmatpush1.bf16.msra.mxu1 %v97_v38  ;;  %938 = vrot.lane.b32.xlu1 %v1715_v39, %s1470_s14 }
  0xe8   :  { %v462_v45 = vpop.permute.xlu1 %461  ;;  %v460_v2 = vpop.permute.xlu0 %459  ;;  %936 = vrot.lane.b32.xlu0 %v1720_v40, %s1470_s14 }
  0xe9   :  { %v471_v59 = vsel %vm467_vm8, %v458_v37, %v462_v45  ;;  %v470_v62 = vsel %vm467_vm8, %v456_v42, %v460_v2 }
  0xea   :  { %v502_v48 = vmul.f32 %v2117_v7, %v471_v59  ;;  %v498_v11 = vmul.f32 %v2117_v7, %v470_v62 }
  0xec   :  { %v454_v61 = vpop.permute.xlu1 %453  ;;  %v452_v39 = vpop.permute.xlu0 %451  ;;  %v506_v63 = vpack.c.bf16 %v502_v48, %v498_v11 }
  0xed   :  { %v473_v8 = vsel %vm467_vm8, %v454_v61, %v458_v37  ;;  %v472_v40 = vsel %vm467_vm8, %v452_v39, %v456_v42 }
  0xee   :  { %v501_v15 = vmul.f32 %v2130_v49, %v473_v8  ;;  %v497_v55 = vmul.f32 %v2130_v49, %v472_v40  ;;  %552 = vmatprep.subr.bf16.mxu0 %v506_v63 }
  0xf0   :  { %v466_v20 = vpop.permute.xlu1 %465  ;;  %v505_v27 = vpack.c.bf16 %v501_v15, %v497_v55 }
  0xf1   :  { %v469_v28 = vsel %vm467_vm8, %v462_v45, %v466_v20  ;;  %v475_v1 = vsel %vm467_vm8, %v466_v20, %v454_v61  ;;  %v464_v3 = vpop.permute.xlu0 %463 }
  0xf2   :  { %v503_v30 = vmul.f32 %v2139_v19, %v469_v28  ;;  %v504_v26 = vmul.f32 %v2142_v17, %v475_v1  ;;  %v468_v22 = vsel %vm467_vm8, %v460_v2, %v464_v3  ;;  %v474_v4 = vsel %vm467_vm8, %v464_v3, %v452_v39  ;;  %553 = vmatpush2.bf16.msra.mxu0 %v505_v27 }
  0xf3   :  { %v499_v31 = vmul.f32 %v2139_v19, %v468_v22  ;;  %v500_v34 = vmul.f32 %v2142_v17, %v474_v4 }
  0xf5   :  { %555 = vmatmul.mubr.bf16.vlgmr.msra.gmra.mxu0 %v1449_v29  ;;  %v508_v37 = vpack.c.bf16 %v504_v26, %v500_v34  ;;  %v507_v42 = vpack.c.bf16 %v503_v30, %v499_v31  ;;  %v1195_v6 = vpop.permute.xlu1 %1194  ;;  %v1193_v38 = vpop.permute.xlu0 %1192 }
  0xf7   :  { %595 = vmatprep.subr.bf16.mxu1 %v508_v37 }
  0xf8   :  { %596 = vmatpush2.bf16.msra.mxu1 %v507_v42 }
  0xf9   :  { %v2159_v45 = vpop.permute.xlu1 %1198 }
  0xfa   :  { %3269 = vst [vmem:[#allocation14_spill] sm:$0xff] %v2159_v45  ;;  %v2161_v59 = vpop.permute.xlu0 %1196  ;;  %v1207_v27 = vsel %vm467_vm8, %v1195_v6, %v2159_v45 }
  0xfb   :  { %598 = vmatmul.mubr.bf16.vlgmr.msra.gmra.mxu1 %v1449_v29  ;;  %3270 = vst [vmem:[#allocation15_spill] sm:$0xff] %v2161_v59  ;;  %v1206_v28 = vsel %vm467_vm8, %v1193_v38, %v2161_v59  ;;  %v1217_v26 = vmul.f32 %v1207_v27, %v2117_v7 }
  0xfc   :  { %v1213_v22 = vmul.f32 %v1206_v28, %v2117_v7 }
  0xfd   :  { %v2163_v2 = vpop.permute.xlu1 %1190 }
  0xfe   :  { %3271 = vst [vmem:[#allocation16_spill] sm:$0xff] %v2163_v2  ;;  %v2165_v62 = vpop.permute.xlu0 %1188  ;;  %v1209_v55 = vsel %vm467_vm8, %v2163_v2, %v1195_v6  ;;  %v1221_v37 = vpack.c.bf16 %v1217_v26, %v1213_v22 }
  0xff   :  { %3272 = vst [vmem:[#allocation17_spill] sm:$0xff] %v2165_v62  ;;  %v1208_v20 = vsel %vm467_vm8, %v2165_v62, %v1193_v38  ;;  %v1216_v29 = vmul.f32 %v1209_v55, %v2130_v49 }
 0x100   :  { %v1212_v30 = vmul.f32 %v1208_v20, %v2130_v49  ;;  %1300 = vmatprep.subr.bf16.mxu1 %v1221_v37 }
 0x101   :  { %v1159_v48 = vpop.permute.xlu1 %1158 }
 0x102   :  { %v1157_v11 = vpop.permute.xlu0 %1156  ;;  %v1220_v34 = vpack.c.bf16 %v1216_v29, %v1212_v30 }
 0x104   :  { %1301 = vmatpush1.bf16.msra.mxu1 %v1220_v34 }
 0x105   :  { %v2167_v61 = vpop.permute.xlu1 %1162 }
 0x106   :  { %3273 = vst [vmem:[#allocation18_spill] sm:$0xff] %v2167_v61  ;;  %v2169_v39 = vpop.permute.xlu0 %1160  ;;  %v1171_v20 = vsel %vm409_vm0, %v1159_v48, %v2167_v61 }
 0x107   :  { %3274 = vst [vmem:[#allocation19_spill] sm:$0xff] %v2169_v39  ;;  %v1170_v27 = vsel %vm409_vm0, %v1157_v11, %v2169_v39  ;;  %v1181_v22 = vmul.f32 %v1171_v20, %v1675_v16 }
 0x108   :  { %v1177_v34 = vmul.f32 %v1170_v27, %v1675_v16 }
 0x109   :  { %v2171_v63 = vpop.permute.xlu1 %1154 }
 0x10a   :  { %3275 = vst [vmem:[#allocation20_spill] sm:$0xff] %v2171_v63  ;;  %v2173_v8 = vpop.permute.xlu0 %1152  ;;  %v1173_v38 = vsel %vm409_vm0, %v2171_v63, %v1159_v48  ;;  %v1185_v61 = vpack.c.bf16 %v1181_v22, %v1177_v34 }
 0x10b   :  { %3276 = vst [vmem:[#allocation21_spill] sm:$0xff] %v2173_v8  ;;  %v1172_v55 = vsel %vm409_vm0, %v2173_v8, %v1157_v11  ;;  %v1180_v30 = vmul.f32 %v1173_v38, %v1692_v25 }
 0x10c   :  { %v1176_v26 = vmul.f32 %v1172_v55, %v1692_v25  ;;  %1302 = vmatprep.subr.bf16.mxu1 %v1185_v61 }
 0x10d   :  { %v2175_v40 = vpop.permute.xlu1 %1122 }
 0x10e   :  { %3277 = vst [vmem:[#allocation22_spill] sm:$0xff] %v2175_v40  ;;  %v2177_v15 = vpop.permute.xlu0 %1120  ;;  %v1184_v48 = vpack.c.bf16 %v1180_v30, %v1176_v26 }
 0x10f   :  { %3278 = vst [vmem:[#allocation23_spill] sm:$0xff] %v2177_v15 }
 0x110   :  { %1303 = vmatpush1.bf16.msra.mxu1 %v1184_v48 }
 0x111   :  { %v2191_v1 = vpop.permute.xlu1 %1126 }
 0x112   :  { %3279 = vst [vmem:[#allocation24_spill] sm:$0xff] %v2191_v1  ;;  %v2193_v3 = vpop.permute.xlu0 %1124 }
 0x113   :  { %3280 = vst [vmem:[#allocation25_spill] sm:$0xff] %v2193_v3 }
 0x115   :  { %v2199_v4 = vpop.permute.xlu1 %1118 }
 0x116   :  { %3281 = vst [vmem:[#allocation26_spill] sm:$0xff] %v2199_v4  ;;  %v2201_v31 = vpop.permute.xlu0 %1116 }
 0x117   :  { %3282 = vst [vmem:[#allocation27_spill] sm:$0xff] %v2201_v31 }
 0x119   :  { %v2203_v42 = vpop.permute.xlu1 %1086 }
 0x11a   :  { %3283 = vst [vmem:[#allocation28_spill] sm:$0xff] %v2203_v42  ;;  %v2205_v6 = vpop.permute.xlu0 %1084 }
 0x11b   :  { %3284 = vst [vmem:[#allocation29_spill] sm:$0xff] %v2205_v6 }
 0x11d   :  { %v2219_v28 = vpop.permute.xlu1 %1090 }
 0x11e   :  { %3285 = vst [vmem:[#allocation30_spill] sm:$0xff] %v2219_v28  ;;  %v2221_v29 = vpop.permute.xlu0 %1088 }
 0x11f   :  { %3286 = vst [vmem:[#allocation31_spill] sm:$0xff] %v2221_v29 }
 0x121   :  { %v2227_v37 = vpop.permute.xlu1 %1082 }
 0x122   :  { %3287 = vst [vmem:[#allocation32_spill] sm:$0xff] %v2227_v37  ;;  %v2229_v63 = vpop.permute.xlu0 %1080 }
 0x123   :  { %3288 = vst [vmem:[#allocation33_spill] sm:$0xff] %v2229_v63 }
 0x125   :  { %v2231_v8 = vpop.permute.xlu1 %1130 }
 0x126   :  { %3289 = vst [vmem:[#allocation34_spill] sm:$0xff] %v2231_v8  ;;  %v2233_v11 = vpop.permute.xlu0 %1128 }
 0x127   :  { %3290 = vst [vmem:[#allocation35_spill] sm:$0xff] %v2233_v11 }
 0x129   :  { %v2235_v39 = vpop.permute.xlu1 %1042 }
 0x12a   :  { %3291 = vst [vmem:[#allocation36_spill] sm:$0xff] %v2235_v39  ;;  %v2237_v38 = vpop.permute.xlu0 %1040 }
 0x12b   :  { %3292 = vst [vmem:[#allocation37_spill] sm:$0xff] %v2237_v38 }
 0x12d   :  { %v2239_v55 = vpop.permute.xlu1 %1046 }
 0x12e   :  { %3293 = vst [vmem:[#allocation38_spill] sm:$0xff] %v2239_v55  ;;  %v2241_v20 = vpop.permute.xlu0 %1044 }
 0x12f   :  { %3294 = vst [vmem:[#allocation39_spill] sm:$0xff] %v2241_v20 }
 0x131   :  { %v1095_v27 = vpop.permute.xlu1 %1094 }
 0x132   :  { %v1093_v19 = vpop.permute.xlu0 %1092  ;;  %v1097_v30 = vsel %vm293_vm3, %v2219_v28, %v1095_v27 }
 0x133   :  { %v1096_v26 = vsel %vm293_vm3, %v2221_v29, %v1093_v19  ;;  %v2250_v61 = vmul.f32 %v1097_v30, %v1845_v13 }
 0x134   :  { %v2253_v22 = vmul.f32 %v1096_v26, %v1845_v13 }
 0x135   :  { %3295 = vst [vmem:[#allocation40_spill] sm:$0xff] %v2250_v61  ;;  %v1055_v48 = vpop.permute.xlu1 %1054 }
 0x136   :  { %3296 = vst [vmem:[#allocation41_spill] sm:$0xff] %v2253_v22  ;;  %v1053_v17 = vpop.permute.xlu0 %1052  ;;  %v1063_v59 = vsel %vm231_vm4, %v1055_v48, %v2235_v39  ;;  %v1103_v22 = vsel %vm293_vm3, %v1095_v27, %v2227_v37 }
 0x137   :  { %v1062_v2 = vsel %vm231_vm4, %v1053_v17, %v2237_v38  ;;  %v2264_v45 = vmul.f32 %v1063_v59, %v1896_v0  ;;  %v1102_v59 = vsel %vm293_vm3, %v1093_v19, %v2229_v63  ;;  %v2286_v26 = vmul.f32 %v1103_v22, %v1848_v14 }
 0x138   :  { %v2267_v30 = vmul.f32 %v1062_v2, %v1896_v0 }
 0x139   :  { %3297 = vst [vmem:[#allocation42_spill] sm:$0xff] %v2264_v45  ;;  %v1007_v34 = vpop.permute.xlu1 %1006  ;;  %3303 = vst [vmem:[#allocation48_spill] sm:$0xff] %v2286_v26 }
 0x13a   :  { %3298 = vst [vmem:[#allocation43_spill] sm:$0xff] %v2267_v30  ;;  %v1005_v49 = vpop.permute.xlu0 %1004  ;;  %v2289_v30 = vmul.f32 %v1102_v59, %v1848_v14 }
 0x13c   :  { %3304 = vst [vmem:[#allocation49_spill] sm:$0xff] %v2289_v30 }
 0x13d   :  { %v2271_v62 = vpop.permute.xlu1 %1010 }
 0x13e   :  { %3299 = vst [vmem:[#allocation44_spill] sm:$0xff] %v2271_v62  ;;  %v2273_v7 = vpop.permute.xlu0 %1008 }
 0x13f   :  { %3300 = vst [vmem:[#allocation45_spill] sm:$0xff] %v2273_v7 }
 0x141   :  { %v2281_v61 = vpop.permute.xlu1 %1018 }
 0x142   :  { %3301 = vst [vmem:[#allocation46_spill] sm:$0xff] %v2281_v61  ;;  %v2283_v2 = vpop.permute.xlu0 %1016  ;;  %v1027_v45 = vsel %vm173_vm5, %v2281_v61, %v1007_v34 }
 0x143   :  { %3302 = vst [vmem:[#allocation47_spill] sm:$0xff] %v2283_v2  ;;  %v1026_v27 = vsel %vm173_vm5, %v2283_v2, %v1005_v49  ;;  %v2298_v19 = vmul.f32 %v1027_v45, %v1962_v44 }
 0x144   :  { %v2301_v38 = vmul.f32 %v1026_v27, %v1962_v44 }
 0x145   :  { %3305 = vst [vmem:[#allocation50_spill] sm:$0xff] %v2298_v19  ;;  %v971_v39 = vpop.permute.xlu1 %970 }
 0x146   :  { %3306 = vst [vmem:[#allocation51_spill] sm:$0xff] %v2301_v38  ;;  %v969_v59 = vpop.permute.xlu0 %968 }
 0x149   :  { %v2307_v37 = vpop.permute.xlu1 %974 }
 0x14a   :  { %3307 = vst [vmem:[#allocation52_spill] sm:$0xff] %v2307_v37  ;;  %v2309_v61 = vpop.permute.xlu0 %972 }
 0x14b   :  { %3308 = vst [vmem:[#allocation53_spill] sm:$0xff] %v2309_v61 }
 0x14d   :  { %v1051_v54 = vpop.permute.xlu1 %1050 }
 0x14e   :  { %v1049_v2 = vpop.permute.xlu0 %1048  ;;  %v1057_v45 = vsel %vm231_vm4, %v1051_v54, %v1055_v48  ;;  %v1059_v27 = vsel %vm231_vm4, %v2239_v55, %v1051_v54  ;;  %v1455_v55 = vld [vmem:[%s3163_s4 + $0x4] ss:$12 sps:$4 sm:$0xff]  }
 0x14f   :  { %v1056_v22 = vsel %vm231_vm4, %v1049_v2, %v1053_v17  ;;  %v1058_v63 = vsel %vm231_vm4, %v2241_v20, %v1049_v2  ;;  %v2322_v38 = vmul.f32 %v1059_v27, %v1909_v58  ;;  %v2330_v30 = vmul.f32 %v1057_v45, %v1912_v60  ;;  %1279 = vmatprep.mubr.bf16.mxu0 %v1455_v55 }
 0x150   :  { %v2325_v19 = vmul.f32 %v1058_v63, %v1909_v58  ;;  %v2333_v54 = vmul.f32 %v1056_v22, %v1912_v60  ;;  %v1025_v17 = vsel %vm173_vm5, %v1007_v34, %v2271_v62  ;;  %v1024_v2 = vsel %vm173_vm5, %v1005_v49, %v2273_v7 }
 0x151   :  { %3309 = vst [vmem:[#allocation54_spill] sm:$0xff] %v2322_v38  ;;  %3311 = vst [vmem:[#allocation56_spill] sm:$0xff] %v2330_v30  ;;  %v2342_v63 = vmul.f32 %v1025_v17, %v1949_v33  ;;  %v2345_v27 = vmul.f32 %v1024_v2, %v1949_v33  ;;  %v989_v34 = vsel %vm115_vm6, %v971_v39, %v2307_v37  ;;  %v2357_v48 = vpop.permute.xlu1 %982 }
 0x152   :  { %3310 = vst [vmem:[#allocation55_spill] sm:$0xff] %v2325_v19  ;;  %3312 = vst [vmem:[#allocation57_spill] sm:$0xff] %v2333_v54  ;;  %v988_v49 = vsel %vm115_vm6, %v969_v59, %v2309_v61  ;;  %v2359_v17 = vpop.permute.xlu0 %980  ;;  %v991_v2 = vsel %vm115_vm6, %v2357_v48, %v971_v39  ;;  %v2374_v38 = vmul.f32 %v989_v34, %v2005_v5 }
 0x153   :  { %3313 = vst [vmem:[#allocation58_spill] sm:$0xff] %v2342_v63  ;;  %3314 = vst [vmem:[#allocation59_spill] sm:$0xff] %v2345_v27  ;;  %v990_v22 = vsel %vm115_vm6, %v2359_v17, %v969_v59  ;;  %v2368_v45 = vmul.f32 %v991_v2, %v2018_v43  ;;  %v2377_v27 = vmul.f32 %v988_v49, %v2005_v5 }
 0x154   :  { %3315 = vst [vmem:[#allocation60_spill] sm:$0xff] %v2357_v48  ;;  %3316 = vst [vmem:[#allocation61_spill] sm:$0xff] %v2359_v17  ;;  %v2371_v19 = vmul.f32 %v990_v22, %v2018_v43 }
 0x155   :  { %3317 = vst [vmem:[#allocation62_spill] sm:$0xff] %v2368_v45  ;;  %3319 = vst [vmem:[#allocation64_spill] sm:$0xff] %v2374_v38  ;;  %v2546_v38 = vld [vmem:[%s3162_s1 + $0x30] sm:$0xff] }
 0x156   :  { %3318 = vst [vmem:[#allocation63_spill] sm:$0xff] %v2371_v19  ;;  %3320 = vst [vmem:[#allocation65_spill] sm:$0xff] %v2377_v27 }
 0x157   :  { %3327 = vst [vmem:[#allocation72_spill] sm:$0xff] %v2546_v38 }
 0x1b5   :  { %v556_v37 = vpop.f32.mrf.mxu0 }
 0x1b6   :  { %v616_v22 = vmul.f32 0.1, %v556_v37  ;;  %vm608_vm10 = vcmp.ge.f32.partialorder %v556_v37, 0.0 }
 0x1b7   :  { %v558_v61 = vpop.f32.mrf.mxu0 }
 0x1b8   :  { %v2389_v19 = vsel %vm608_vm10, %v556_v37, %v616_v22  ;;  %v617_v37 = vmul.f32 0.1, %v558_v61  ;;  %vm609_vm13 = vcmp.ge.f32.partialorder %v558_v61, 0.0 }
 0x1b9   :  { %v560_v63 = vpop.f32.mrf.mxu0 }
 0x1ba   :  { %v620_v39 = vmul.f32 0.1, %v560_v63  ;;  %vm612_vm12 = vcmp.ge.f32.partialorder %v560_v63, 0.0 }
 0x1bb   :  { %v599_v59 = vpop.f32.mrf.mxu1 }
 0x1bc   :  { %vm610_vm9 = vcmp.ge.f32.partialorder %v599_v59, 0.0  ;;  %v618_v2 = vmul.f32 0.1, %v599_v59 }
 0x1bd   :  { %v2383_v54 = vpop.f32.mrf.mxu1 }
 0x1be   :  { %v2385_v30 = vsel %vm610_vm9, %v599_v59, %v618_v2  ;;  %v2397_v59 = vsel %vm612_vm12, %v560_v63, %v620_v39  ;;  %v562_v63 = vpop.f32.mrf.mxu0  ;;  %v2447_v39 = vsel %vm609_vm13, %v558_v61, %v617_v37  ;;  %vm611_vm15 = vcmp.ge.f32.partialorder %v2383_v54, 0.0 }
 0x1bf   :  { %860 = vrot.lane.b32.xlu0 %v2385_v30, %s1464_s22  ;;  %v603_v34 = vpop.f32.mrf.mxu1  ;;  %v621_v2 = vmul.f32 0.1, %v562_v63  ;;  %vm613_vm14 = vcmp.ge.f32.partialorder %v562_v63, 0.0  ;;  %v3207_v37 = vmov 0  }
 0x1c0   :  { %vm614_vm11 = vcmp.ge.f32.partialorder %v603_v34, 0.0  ;;  %v622_v49 = vmul.f32 0.1, %v603_v34  ;;  %1320 = vmatprep.mubr.bf16.mxu1 %v3207_v37 }
 0x1c1   :  { %v2453_v22 = vsel %vm613_vm14, %v562_v63, %v621_v2  ;;  %v605_v61 = vpop.f32.mrf.mxu1 }
 0x1c2   :  { %v2391_v45 = vsel %vm614_vm11, %v603_v34, %v622_v49  ;;  %v619_v34 = vmul.f32 0.1, %v2383_v54  ;;  %v2468_v49 = vld [vmem:[%s3163_s4 + $0x8] ss:$12 sps:$4 sm:$0xff]   ;;  %v623_v2 = vmul.f32 0.1, %v605_v61 }
 0x1c3   :  { %862 = vrot.lane.b32.xlu1 %v2391_v45, %s1464_s22  ;;  %852 = vrot.lane.b32.xlu0 %v2389_v19, %s1464_s22  ;;  %3321 = vst [vmem:[#allocation66_spill] sm:$0xff] %v2468_v49  ;;  %vm615_vm9 = vcmp.ge.f32.partialorder %v605_v61, 0.0 }
 0x1c4   :  { %1438 = vmatmul.mubr.msk.bf16.vlgmr.msra.gmra.mxu1 %vm1243_vm1, %v2468_v49  ;;  %v2474_v63 = vsel %vm611_vm15, %v2383_v54, %v619_v34  ;;  %v2480_v27 = vsel %vm615_vm9, %v605_v61, %v623_v2  ;;  %v2514_v54 = vpop.permute.xlu0 %932  ;;  %v2520_v34 = vpop.permute.xlu1 %934  ;;  %v2531_v2 = vld [vmem:[%s3162_s1 + $0x10] sm:$0xff] }
 0x1c5   :  { %3322 = vst [vmem:[#allocation67_spill] sm:$0xff] %v2514_v54  ;;  %3323 = vst [vmem:[#allocation68_spill] sm:$0xff] %v2520_v34  ;;  %1361 = vmatprep.mubr.bf16.mxu1 %v1455_v55 }
 0x1c6   :  { %3325 = vst [vmem:[#allocation70_spill] sm:$0xff] %v2531_v2 }
 0x1c7   :  { %824 = vrot.lane.b32.xlu0 %v2385_v30, %s1465_s10  ;;  %854 = vrot.lane.b32.xlu1 %v2397_v59, %s1464_s22 }
 0x1c8   :  { %v2526_v61 = vpop.permute.xlu0 %936  ;;  %v2537_v37 = vpop.permute.xlu1 %938 }
 0x1c9   :  { %3324 = vst [vmem:[#allocation69_spill] sm:$0xff] %v2526_v61  ;;  %3326 = vst [vmem:[#allocation71_spill] sm:$0xff] %v2537_v37 }
 0x1cb   :  { %816 = vrot.lane.b32.xlu0 %v2389_v19, %s1465_s10  ;;  %826 = vrot.lane.b32.xlu1 %v2391_v45, %s1465_s10 }
 0x1cf   :  { %788 = vrot.lane.b32.xlu0 %v2385_v30, %s1466_s0  ;;  %818 = vrot.lane.b32.xlu1 %v2397_v59, %s1465_s10 }
 0x1d3   :  { %780 = vrot.lane.b32.xlu0 %v2389_v19, %s1466_s0  ;;  %790 = vrot.lane.b32.xlu1 %v2391_v45, %s1466_s0 }
 0x1d7   :  { %740 = vrot.lane.b32.xlu0 %v2389_v19, %s1467_s11  ;;  %782 = vrot.lane.b32.xlu1 %v2397_v59, %s1466_s0 }
 0x1db   :  { %704 = vrot.lane.b32.xlu0 %v2389_v19, %s1468_s12  ;;  %742 = vrot.lane.b32.xlu1 %v2397_v59, %s1467_s11 }
 0x1df   :  { %668 = vrot.lane.b32.xlu0 %v2389_v19, %s1469_s13  ;;  %706 = vrot.lane.b32.xlu1 %v2397_v59, %s1468_s12 }
 0x1e3   :  { %748 = vrot.lane.b32.xlu0 %v2385_v30, %s1467_s11  ;;  %670 = vrot.lane.b32.xlu1 %v2397_v59, %s1469_s13 }
 0x1e7   :  { %632 = vrot.lane.b32.xlu0 %v2389_v19, %s1470_s14  ;;  %750 = vrot.lane.b32.xlu1 %v2391_v45, %s1467_s11 }
 0x1eb   :  { %712 = vrot.lane.b32.xlu0 %v2385_v30, %s1468_s12  ;;  %634 = vrot.lane.b32.xlu1 %v2397_v59, %s1470_s14 }
 0x1ef   :  { %676 = vrot.lane.b32.xlu0 %v2385_v30, %s1469_s13  ;;  %714 = vrot.lane.b32.xlu1 %v2391_v45, %s1468_s12 }
 0x1f3   :  { %640 = vrot.lane.b32.xlu0 %v2385_v30, %s1470_s14  ;;  %678 = vrot.lane.b32.xlu1 %v2391_v45, %s1469_s13 }
 0x1f7   :  { %856 = vrot.lane.b32.xlu0 %v2447_v39, %s1464_s22  ;;  %642 = vrot.lane.b32.xlu1 %v2391_v45, %s1470_s14 }
 0x1fb   :  { %820 = vrot.lane.b32.xlu0 %v2447_v39, %s1465_s10  ;;  %858 = vrot.lane.b32.xlu1 %v2453_v22, %s1464_s22 }
 0x1ff   :  { %784 = vrot.lane.b32.xlu0 %v2447_v39, %s1466_s0  ;;  %822 = vrot.lane.b32.xlu1 %v2453_v22, %s1465_s10 }
 0x203   :  { %864 = vrot.lane.b32.xlu0 %v2474_v63, %s1464_s22  ;;  %786 = vrot.lane.b32.xlu1 %v2453_v22, %s1466_s0 }
 0x207   :  { %828 = vrot.lane.b32.xlu0 %v2474_v63, %s1465_s10  ;;  %866 = vrot.lane.b32.xlu1 %v2480_v27, %s1464_s22 }
 0x20b   :  { %744 = vrot.lane.b32.xlu0 %v2447_v39, %s1467_s11  ;;  %830 = vrot.lane.b32.xlu1 %v2480_v27, %s1465_s10 }
 0x20f   :  { %792 = vrot.lane.b32.xlu0 %v2474_v63, %s1466_s0  ;;  %746 = vrot.lane.b32.xlu1 %v2453_v22, %s1467_s11 }
 0x213   :  { %752 = vrot.lane.b32.xlu0 %v2474_v63, %s1467_s11  ;;  %794 = vrot.lane.b32.xlu1 %v2480_v27, %s1466_s0 }
 0x217   :  { %708 = vrot.lane.b32.xlu0 %v2447_v39, %s1468_s12  ;;  %754 = vrot.lane.b32.xlu1 %v2480_v27, %s1467_s11 }
 0x21b   :  { %716 = vrot.lane.b32.xlu0 %v2474_v63, %s1468_s12  ;;  %710 = vrot.lane.b32.xlu1 %v2453_v22, %s1468_s12 }
 0x21f   :  { %672 = vrot.lane.b32.xlu0 %v2447_v39, %s1469_s13  ;;  %718 = vrot.lane.b32.xlu1 %v2480_v27, %s1468_s12 }
 0x223   :  { %680 = vrot.lane.b32.xlu0 %v2474_v63, %s1469_s13  ;;  %674 = vrot.lane.b32.xlu1 %v2453_v22, %s1469_s13 }
 0x227   :  { %636 = vrot.lane.b32.xlu0 %v2447_v39, %s1470_s14  ;;  %682 = vrot.lane.b32.xlu1 %v2480_v27, %s1469_s13 }
 0x22b   :  { %644 = vrot.lane.b32.xlu0 %v2474_v63, %s1470_s14  ;;  %638 = vrot.lane.b32.xlu1 %v2453_v22, %s1470_s14 }
 0x22f   :  { %1012 = vrot.lane.b32.xlu0 %v2531_v2, %s1468_s12  ;;  %646 = vrot.lane.b32.xlu1 %v2480_v27, %s1470_s14 }
 0x231   :  { %v2539_v49 = vpop.permute.xlu0 %860 }
 0x233   :  { %944 = vrot.lane.b32.xlu0 %v1934_v24, %s1470_s14  ;;  %1014 = vrot.lane.b32.xlu1 %v2546_v38, %s1468_s12 }
 0x235   :  { %v2550_v7 = vpop.permute.xlu1 %862  ;;  %v2552_v48 = vpop.permute.xlu0 %852 }
 0x237   :  { %892 = vrot.lane.b32.xlu0 %v2447_v39, %s1471_s15  ;;  %946 = vrot.lane.b32.xlu1 %v1921_v12, %s1470_s14 }
 0x239   :  { %v2558_v17 = vpop.permute.xlu0 %824  ;;  %v2560_v54 = vpop.permute.xlu1 %854 }
 0x23b   :  { %896 = vrot.lane.b32.xlu0 %v2385_v30, %s1471_s15  ;;  %898 = vrot.lane.b32.xlu1 %v2391_v45, %s1471_s15 }
 0x23d   :  { %v2566_v61 = vpop.permute.xlu0 %816  ;;  %v2568_v62 = vpop.permute.xlu1 %826 }
 0x23f   :  { %976 = vrot.lane.b32.xlu0 %v2531_v2, %s1469_s13  ;;  %978 = vrot.lane.b32.xlu1 %v2546_v38, %s1469_s13 }
 0x241   :  { %v2574_v34 = vpop.permute.xlu0 %788  ;;  %v2576_v37 = vpop.permute.xlu1 %818 }
 0x243   :  { %888 = vrot.lane.b32.xlu0 %v2389_v19, %s1471_s15  ;;  %894 = vrot.lane.b32.xlu1 %v2453_v22, %s1471_s15 }
 0x245   :  { %v2582_v26 = vpop.permute.xlu0 %780  ;;  %v2584_v20 = vpop.permute.xlu1 %790 }
 0x247   :  { %940 = vrot.lane.b32.xlu0 %v2531_v2, %s1470_s14  ;;  %890 = vrot.lane.b32.xlu1 %v2397_v59, %s1471_s15 }
 0x249   :  { %v2593_v47 = vpop.permute.xlu0 %740  ;;  %v2595_v18 = vpop.permute.xlu1 %782 }
 0x24b   :  { %1200 = vrot.lane.b32.xlu0 %v1934_v24, %s1471_s15  ;;  %942 = vrot.lane.b32.xlu1 %v2546_v38, %s1470_s14 }
 0x24d   :  { %v2601_v2 = vpop.permute.xlu0 %704  ;;  %v2603_v6 = vpop.permute.xlu1 %742 }
 0x24f   :  { %900 = vrot.lane.b32.xlu0 %v2474_v63, %s1471_s15  ;;  %1202 = vrot.lane.b32.xlu1 %v1921_v12, %s1471_s15 }
 0x251   :  { %v2609_v29 = vpop.permute.xlu0 %668  ;;  %v2611_v36 = vpop.permute.xlu1 %706 }
 0x252   :  { %3328 = vst [vmem:[#allocation73_spill] sm:$0xff] %v2609_v29 }
 0x253   :  { %1164 = vrot.lane.b32.xlu0 %v1934_v24, %s1464_s22  ;;  %902 = vrot.lane.b32.xlu1 %v2480_v27, %s1471_s15 }
 0x255   :  { %v2617_v55 = vpop.permute.xlu0 %748  ;;  %v2619_v38 = vpop.permute.xlu1 %670 }
 0x256   :  { %3329 = vst [vmem:[#allocation74_spill] sm:$0xff] %v2619_v38 }
 0x257   :  { %1166 = vrot.lane.b32.xlu1 %v1921_v12, %s1464_s22 }
 0x259   :  { %v2623_v11 = vpop.permute.xlu0 %632  ;;  %v2625_v8 = vpop.permute.xlu1 %750 }
 0x25a   :  { %3330 = vst [vmem:[#allocation75_spill] sm:$0xff] %v2623_v11 }
 0x25d   :  { %v2627_v42 = vpop.permute.xlu0 %712  ;;  %v2629_v28 = vpop.permute.xlu1 %634 }
 0x25e   :  { %3331 = vst [vmem:[#allocation76_spill] sm:$0xff] %v2629_v28 }
 0x261   :  { %v2631_v31 = vpop.permute.xlu0 %676  ;;  %v2633_v24 = vpop.permute.xlu1 %714 }
 0x262   :  { %3332 = vst [vmem:[#allocation77_spill] sm:$0xff] %v2631_v31 }
 0x265   :  { %v2635_v52 = vpop.permute.xlu0 %640  ;;  %v2637_v57 = vpop.permute.xlu1 %678 }
 0x266   :  { %3333 = vst [vmem:[#allocation78_spill] sm:$0xff] %v2635_v52  ;;  %3334 = vst [vmem:[#allocation79_spill] sm:$0xff] %v2637_v57 }
 0x269   :  { %v857_v43 = vpop.permute.xlu0 %856  ;;  %v2639_v4 = vpop.permute.xlu1 %642 }
 0x26a   :  { %3335 = vst [vmem:[#allocation80_spill] sm:$0xff] %v2639_v4  ;;  %v870_v12 = vsel %vm409_vm0, %v857_v43, %v2539_v49  ;;  %v872_v11 = vsel %vm409_vm0, %v2552_v48, %v857_v43 }
 0x26b   :  { %v876_v4 = vmul.f32 %v872_v11, %v1692_v25  ;;  %v877_v40 = vmul.f32 %v870_v12, %v1675_v16 }
 0x26d   :  { %v821_v28 = vpop.permute.xlu0 %820  ;;  %v859_v15 = vpop.permute.xlu1 %858 }
 0x26e   :  { %v871_v3 = vsel %vm409_vm0, %v859_v15, %v2550_v7  ;;  %v873_v52 = vsel %vm409_vm0, %v2560_v54, %v859_v15  ;;  %v834_v43 = vsel %vm351_vm2, %v821_v28, %v2558_v17  ;;  %v836_v31 = vsel %vm351_vm2, %v2566_v61, %v821_v28 }
 0x26f   :  { %v880_v1 = vmul.f32 %v873_v52, %v1692_v25  ;;  %v881_v57 = vmul.f32 %v871_v3, %v1675_v16  ;;  %v840_v25 = vmul.f32 %v836_v31, %v1776_v9  ;;  %v841_v52 = vmul.f32 %v834_v43, %v1753_v56 }
 0x271   :  { %v884_v5 = vpack.c.bf16 %v880_v1, %v876_v4  ;;  %v785_v38 = vpop.permute.xlu0 %784  ;;  %v823_v29 = vpop.permute.xlu1 %822  ;;  %v885_v15 = vpack.c.bf16 %v881_v57, %v877_v40 }
 0x272   :  { %v835_v11 = vsel %vm351_vm2, %v823_v29, %v2568_v62  ;;  %v837_v16 = vsel %vm351_vm2, %v2576_v37, %v823_v29  ;;  %v798_v57 = vsel %vm293_vm3, %v785_v38, %v2574_v34  ;;  %v800_v40 = vsel %vm293_vm3, %v2582_v26, %v785_v38 }
 0x273   :  { %v844_v3 = vmul.f32 %v837_v16, %v1776_v9  ;;  %v845_v28 = vmul.f32 %v835_v11, %v1753_v56  ;;  %1247 = vmatprep.subr.bf16.mxu0 %v885_v15  ;;  %v804_v15 = vmul.f32 %v800_v40, %v1832_v53  ;;  %v805_v11 = vmul.f32 %v798_v57, %v1819_v46 }
 0x274   :  { %1248 = vmatpush1.bf16.msra.mxu0 %v884_v5 }
 0x275   :  { %v848_v1 = vpack.c.bf16 %v844_v3, %v840_v25  ;;  %v865_v4 = vpop.permute.xlu0 %864  ;;  %v787_v29 = vpop.permute.xlu1 %786  ;;  %v849_v31 = vpack.c.bf16 %v845_v28, %v841_v52 }
 0x276   :  { %v799_v12 = vsel %vm293_vm3, %v787_v29, %v2584_v20  ;;  %v801_v43 = vsel %vm293_vm3, %v2595_v18, %v787_v29  ;;  %v868_v38 = vsel %vm409_vm0, %v2539_v49, %v865_v4  ;;  %v874_v25 = vsel %vm409_vm0, %v865_v4, %v2552_v48 }
 0x277   :  { %v808_v16 = vmul.f32 %v801_v43, %v1832_v53  ;;  %v809_v5 = vmul.f32 %v799_v12, %v1819_v46  ;;  %1249 = vmatprep.subr.bf16.mxu0 %v849_v31  ;;  %v777_v49 = vpack.c.bf16 %v2453_v22, %v2447_v39  ;;  %v878_v31 = vmul.f32 %v868_v38, %v1708_v35 }
 0x278   :  { %1250 = vmatpush1.bf16.msra.mxu0 %v848_v1  ;;  %v879_v48 = vmul.f32 %v874_v25, %v1701_v32 }
 0x279   :  { %v812_v52 = vpack.c.bf16 %v808_v16, %v804_v15  ;;  %v829_v3 = vpop.permute.xlu0 %828  ;;  %v867_v28 = vpop.permute.xlu1 %866  ;;  %v813_v40 = vpack.c.bf16 %v809_v5, %v805_v11 }
 0x27a   :  { %v869_v57 = vsel %vm409_vm0, %v2550_v7, %v867_v28  ;;  %v875_v29 = vsel %vm409_vm0, %v867_v28, %v2560_v54  ;;  %v832_v7 = vsel %vm351_vm2, %v2558_v17, %v829_v3  ;;  %v838_v54 = vsel %vm351_vm2, %v829_v3, %v2566_v61 }
 0x27b   :  { %v882_v1 = vmul.f32 %v869_v57, %v1708_v35  ;;  %v883_v4 = vmul.f32 %v875_v29, %v1701_v32  ;;  %1251 = vmatprep.subr.bf16.mxu0 %v813_v40  ;;  %v776_v17 = vpack.c.bf16 %v2397_v59, %v2389_v19  ;;  %v842_v16 = vmul.f32 %v832_v7, %v1789_v21 }
 0x27c   :  { %1252 = vmatpush1.bf16.msra.mxu0 %v812_v52  ;;  %v843_v61 = vmul.f32 %v838_v54, %v1792_v23 }
 0x27d   :  { %v886_v12 = vpack.c.bf16 %v882_v1, %v878_v31  ;;  %v745_v39 = vpop.permute.xlu0 %744  ;;  %v831_v22 = vpop.permute.xlu1 %830  ;;  %1253 = vmatprep.subr.bf16.mxu0 %v777_v49  ;;  %v887_v43 = vpack.c.bf16 %v883_v4, %v879_v48 }
 0x27e   :  { %v833_v15 = vsel %vm351_vm2, %v2568_v62, %v831_v22  ;;  %v839_v11 = vsel %vm351_vm2, %v831_v22, %v2576_v37  ;;  %v760_v62 = vsel %vm231_vm4, %v2593_v47, %v745_v39 }
 0x27f   :  { %v846_v5 = vmul.f32 %v833_v15, %v1789_v21  ;;  %v847_v38 = vmul.f32 %v839_v11, %v1792_v23  ;;  %1329 = vmatprep.subr.bf16.mxu1 %v887_v43  ;;  %v765_v59 = vmul.f32 %v760_v62, %v1881_v41 }
 0x280   :  { %1254 = vmatpush1.bf16.msra.mxu0 %v776_v17  ;;  %1330 = vmatpush1.bf16.msra.mxu1 %v886_v12 }
 0x281   :  { %v850_v25 = vpack.c.bf16 %v846_v5, %v842_v16  ;;  %v793_v37 = vpop.permute.xlu0 %792  ;;  %v747_v52 = vpop.permute.xlu1 %746  ;;  %v851_v3 = vpack.c.bf16 %v847_v38, %v843_v61  ;;  %v778_v38 = vpack.c.bf16 %v2391_v45, %v2385_v30 }
 0x282   :  { %v761_v19 = vsel %vm231_vm4, %v2603_v6, %v747_v52  ;;  %v796_v40 = vsel %vm293_vm3, %v2574_v34, %v793_v37  ;;  %v802_v57 = vsel %vm293_vm3, %v793_v37, %v2582_v26  ;;  %v759_v15 = vsel %vm231_vm4, %v747_v52, %v2625_v8 }
 0x283   :  { %v769_v28 = vmul.f32 %v761_v19, %v1881_v41  ;;  %1331 = vmatprep.subr.bf16.mxu1 %v851_v3  ;;  %v806_v4 = vmul.f32 %v796_v40, %v1845_v13  ;;  %v807_v34 = vmul.f32 %v802_v57, %v1848_v14 }
 0x284   :  { %1332 = vmatpush1.bf16.msra.mxu1 %v850_v25 }
 0x285   :  { %v753_v29 = vpop.permute.xlu0 %752  ;;  %v795_v49 = vpop.permute.xlu1 %794  ;;  %v773_v31 = vpack.c.bf16 %v769_v28, %v765_v59 }
 0x286   :  { %v797_v48 = vsel %vm293_vm3, %v2584_v20, %v795_v49  ;;  %v803_v1 = vsel %vm293_vm3, %v795_v49, %v2595_v18  ;;  %v762_v54 = vsel %vm231_vm4, %v753_v29, %v2593_v47  ;;  %v779_v18 = vpack.c.bf16 %v2480_v27, %v2474_v63 }
 0x287   :  { %v810_v7 = vmul.f32 %v797_v48, %v1845_v13  ;;  %v811_v26 = vmul.f32 %v803_v1, %v1848_v14  ;;  %1255 = vmatprep.subr.bf16.mxu0 %v773_v31  ;;  %v756_v13 = vsel %vm231_vm4, %v2617_v55, %v753_v29  ;;  %v758_v27 = vsel %vm231_vm4, %v745_v39, %v2617_v55 }
 0x288   :  { %v764_v63 = vmul.f32 %v762_v54, %v1896_v0  ;;  %v766_v39 = vmul.f32 %v758_v27, %v1909_v58  ;;  %v3343_v27 = vld [vmem:[#allocation25_spill] sm:$0xff] }
 0x289   :  { %v814_v12 = vpack.c.bf16 %v810_v7, %v806_v4  ;;  %v709_v22 = vpop.permute.xlu0 %708  ;;  %v755_v20 = vpop.permute.xlu1 %754  ;;  %v815_v43 = vpack.c.bf16 %v811_v26, %v807_v34  ;;  %v3337_v34 = vld [vmem:[#allocation74_spill] sm:$0xff] }
 0x28a   :  { %v757_v14 = vsel %vm231_vm4, %v2625_v8, %v755_v20  ;;  %v763_v47 = vsel %vm231_vm4, %v755_v20, %v2603_v6  ;;  %v724_v16 = vsel %vm173_vm5, %v2601_v2, %v709_v22  ;;  %v770_v8 = vmul.f32 %v759_v15, %v1909_v58  ;;  %v3339_v20 = vld [vmem:[#allocation77_spill] sm:$0xff] }
 0x28b   :  { %v768_v11 = vmul.f32 %v763_v47, %v1896_v0  ;;  %v771_v17 = vmul.f32 %v757_v14, %v1912_v60  ;;  %1333 = vmatprep.subr.bf16.mxu1 %v815_v43  ;;  %v767_v6 = vmul.f32 %v756_v13, %v1912_v60  ;;  %v729_v62 = vmul.f32 %v724_v16, %v1949_v33  ;;  %v3341_v13 = vld [vmem:[#allocation24_spill] sm:$0xff]  ;;  %v3342_v14 = vld [vmem:[#allocation22_spill] sm:$0xff] }
 0x28c   :  { %1334 = vmatpush1.bf16.msra.mxu1 %v814_v12  ;;  %v774_v30 = vpack.c.bf16 %v770_v8, %v766_v39  ;;  %v1135_v47 = vsel %vm351_vm2, %v3342_v14, %v3341_v13 }
 0x28d   :  { %v772_v61 = vpack.c.bf16 %v768_v11, %v764_v63  ;;  %v717_v5 = vpop.permute.xlu0 %716  ;;  %1335 = vmatprep.subr.bf16.mxu1 %v779_v18  ;;  %v711_v55 = vpop.permute.xlu1 %710  ;;  %v775_v37 = vpack.c.bf16 %v771_v17, %v767_v6  ;;  %v3340_v18 = vld [vmem:[#allocation79_spill] sm:$0xff]  ;;  %v3345_v17 = vld [vmem:[#allocation26_spill] sm:$0xff] }
 0x28e   :  { %v725_v0 = vsel %vm173_vm5, %v2611_v36, %v711_v55  ;;  %v726_v25 = vsel %vm173_vm5, %v717_v5, %v2601_v2  ;;  %v720_v58 = vsel %vm173_vm5, %v2627_v42, %v717_v5  ;;  %v723_v52 = vsel %vm173_vm5, %v711_v55, %v2633_v24  ;;  %v3344_v63 = vld [vmem:[#allocation23_spill] sm:$0xff] }
 0x28f   :  { %v733_v60 = vmul.f32 %v725_v0, %v1949_v33  ;;  %1256 = vmatpush1.bf16.msra.mxu0 %v772_v61  ;;  %v722_v33 = vsel %vm173_vm5, %v709_v22, %v2627_v42  ;;  %v728_v2 = vmul.f32 %v726_v25, %v1962_v44  ;;  %v731_v40 = vmul.f32 %v720_v58, %v1978_v51  ;;  %v3336_v42 = vld [vmem:[#allocation73_spill] sm:$0xff]  ;;  %v3346_v55 = vld [vmem:[#allocation3_spill] sm:$0xff] }
 0x290   :  { %1336 = vmatpush1.bf16.msra.mxu1 %v778_v38  ;;  %v734_v57 = vmul.f32 %v723_v52, %v1975_v50  ;;  %v1134_v11 = vsel %vm351_vm2, %v3344_v63, %v3343_v27  ;;  %v1137_v16 = vsel %vm351_vm2, %v3345_v17, %v3342_v14  ;;  %v3360_v14 = vld [vmem:[#allocation78_spill] sm:$0xff] }
 0x291   :  { %v673_v45 = vpop.permute.xlu0 %672  ;;  %1337 = vmatprep.subr.bf16.mxu1 %v775_v37  ;;  %v719_v3 = vpop.permute.xlu1 %718  ;;  %v737_v19 = vpack.c.bf16 %v733_v60, %v729_v62  ;;  %v3347_v62 = vld [vmem:[#allocation5_spill] sm:$0xff]  ;;  %v3348_v60 = vld [vmem:[#allocation4_spill] sm:$0xff] }
 0x292   :  { %v721_v59 = vsel %vm173_vm5, %v2633_v24, %v719_v3  ;;  %v727_v28 = vsel %vm173_vm5, %v719_v3, %v2611_v36  ;;  %v688_v31 = vsel %vm115_vm6, %v3336_v42, %v673_v45  ;;  %v730_v24 = vmul.f32 %v722_v33, %v1975_v50  ;;  %v3349_v3 = vld [vmem:[#allocation27_spill] sm:$0xff] }
 0x293   :  { %v732_v29 = vmul.f32 %v727_v28, %v1962_v44  ;;  %v735_v49 = vmul.f32 %v721_v59, %v1978_v51  ;;  %1257 = vmatprep.subr.bf16.mxu0 %v737_v19  ;;  %v3338_v44 = vld [vmem:[#allocation2_spill] sm:$0xff]  ;;  %v686_v5 = vsel %vm115_vm6, %v673_v45, %v3339_v20  ;;  %v1141_v45 = vmul.f32 %v1134_v11, %v1753_v56  ;;  %v3350_v33 = vld [vmem:[#allocation75_spill] sm:$0xff] }
 0x294   :  { %1338 = vmatpush1.bf16.msra.mxu1 %v774_v30  ;;  %v738_v26 = vpack.c.bf16 %v734_v57, %v730_v24  ;;  %v693_v54 = vmul.f32 %v688_v31, %v3338_v44  ;;  %v1145_v30 = vmul.f32 %v1135_v47, %v1753_v56  ;;  %v1136_v19 = vsel %vm351_vm2, %v3349_v3, %v3344_v63  ;;  %v3352_v56 = vld [vmem:[#allocation28_spill] sm:$0xff]  ;;  %v3353_v24 = vld [vmem:[#allocation34_spill] sm:$0xff] }
 0x295   :  { %v736_v48 = vpack.c.bf16 %v732_v29, %v728_v2  ;;  %v681_v1 = vpop.permute.xlu0 %680  ;;  %v675_v4 = vpop.permute.xlu1 %674  ;;  %v739_v36 = vpack.c.bf16 %v735_v49, %v731_v40  ;;  %v2862_v59 = vmul.f32 %v1137_v16, %v1776_v9  ;;  %v694_v28 = vmul.f32 %v686_v5, %v3348_v60 }
 0x296   :  { %v689_v7 = vsel %vm115_vm6, %v3337_v34, %v675_v4  ;;  %v690_v12 = vsel %vm115_vm6, %v681_v1, %v3336_v42  ;;  %v684_v43 = vsel %vm115_vm6, %v3339_v20, %v681_v1  ;;  %v687_v15 = vsel %vm115_vm6, %v675_v4, %v3340_v18  ;;  %v3351_v42 = vld [vmem:[#allocation30_spill] sm:$0xff]  ;;  %v3354_v1 = vld [vmem:[#allocation35_spill] sm:$0xff] }
 0x297   :  { %v697_v22 = vmul.f32 %v689_v7, %v3338_v44  ;;  %1258 = vmatpush1.bf16.msra.mxu0 %v736_v48  ;;  %1339 = vmatprep.subr.bf16.mxu1 %v739_v36  ;;  %v692_v39 = vmul.f32 %v690_v12, %v3346_v55  ;;  %v695_v25 = vmul.f32 %v684_v43, %v3347_v62  ;;  %v3355_v36 = vld [vmem:[#allocation76_spill] sm:$0xff]  ;;  %v3358_v20 = vld [vmem:[#allocation31_spill] sm:$0xff]  ;;  %v3359_v43 = vld [vmem:[#allocation29_spill] sm:$0xff] }
 0x298   :  { %1340 = vmatpush1.bf16.msra.mxu1 %v738_v26  ;;  %v698_v37 = vmul.f32 %v687_v15, %v3348_v60  ;;  %v1099_v31 = vsel %vm293_vm3, %v3352_v56, %v3351_v42  ;;  %v1139_v48 = vsel %vm351_vm2, %v3353_v24, %v3345_v17  ;;  %v1138_v4 = vsel %vm351_vm2, %v3354_v1, %v3349_v3  ;;  %v3356_v26 = vld [vmem:[#allocation6_spill] sm:$0xff] }
 0x299   :  { %v637_v8 = vpop.permute.xlu0 %636  ;;  %v683_v6 = vpop.permute.xlu1 %682  ;;  %v701_v61 = vpack.c.bf16 %v697_v22, %v693_v54  ;;  %v3357_v54 = vld [vmem:[#allocation80_spill] sm:$0xff]  ;;  %v1133_v15 = vsel %vm351_vm2, %v3341_v13, %v3353_v24  ;;  %v1147_v11 = vmul.f32 %v1139_v48, %v1792_v23  ;;  %v1132_v17 = vsel %vm351_vm2, %v3343_v27, %v3354_v1 }
 0x29a   :  { %v685_v0 = vsel %vm115_vm6, %v3340_v18, %v683_v6  ;;  %v691_v38 = vsel %vm115_vm6, %v683_v6, %v3337_v34  ;;  %v652_v2 = vsel %vm57_vm7, %v3350_v33, %v637_v8  ;;  %v702_v7 = vpack.c.bf16 %v698_v37, %v694_v28  ;;  %v3364_v28 = vld [vmem:[#allocation32_spill] sm:$0xff] }
 0x29b   :  { %v696_v58 = vmul.f32 %v691_v38, %v3346_v55  ;;  %v699_v52 = vmul.f32 %v685_v0, %v3347_v62  ;;  %1259 = vmatprep.subr.bf16.mxu0 %v701_v61  ;;  %v657_v44 = vmul.f32 %v652_v2, %v3356_v26  ;;  %v1098_v18 = vsel %vm293_vm3, %v3359_v43, %v3358_v20  ;;  %v3361_v55 = vld [vmem:[#allocation8_spill] sm:$0xff]  ;;  %v3362_v38 = vld [vmem:[#allocation7_spill] sm:$0xff] }
 0x29c   :  { %v650_v13 = vsel %vm57_vm7, %v637_v8, %v3360_v14  ;;  %v1143_v5 = vmul.f32 %v1138_v4, %v1792_v23  ;;  %v3363_v8 = vld [vmem:[#allocation9_spill] sm:$0xff]  ;;  %v1140_v23 = vmul.f32 %v1136_v19, %v1776_v9  ;;  %v1109_v3 = vmul.f32 %v1099_v31, %v1819_v46  ;;  %v1459_v20 = vld [vmem:[%s3162_s1 + $0x8] sm:$0xff] }
 0x29d   :  { %v700_v40 = vpack.c.bf16 %v696_v58, %v692_v39  ;;  %v645_v57 = vpop.permute.xlu0 %644  ;;  %v639_v29 = vpop.permute.xlu1 %638  ;;  %v703_v49 = vpack.c.bf16 %v699_v52, %v695_v25  ;;  %v658_v2 = vmul.f32 %v650_v13, %v3361_v55  ;;  %v1146_v31 = vmul.f32 %v1133_v15, %v1789_v21  ;;  %v1461_v13 = vld [vmem:[%s3162_s1 + $0x18] sm:$0xff] }
 0x29e   :  { %v653_v34 = vsel %vm57_vm7, %v3355_v36, %v639_v29  ;;  %v651_v12 = vsel %vm57_vm7, %v639_v29, %v3357_v54  ;;  %v648_v47 = vsel %vm57_vm7, %v3360_v14, %v645_v57  ;;  %v654_v63 = vsel %vm57_vm7, %v645_v57, %v3350_v33  ;;  %v3365_v57 = vld [vmem:[#allocation33_spill] sm:$0xff]  ;;  %v3370_v14 = vld [vmem:[#allocation48_spill] sm:$0xff] }
 0x29f   :  { %v661_v22 = vmul.f32 %v653_v34, %v3356_v26  ;;  %1260 = vmatpush1.bf16.msra.mxu0 %v700_v40  ;;  %1341 = vmatprep.subr.bf16.mxu1 %v703_v49  ;;  %v662_v39 = vmul.f32 %v651_v12, %v3361_v55  ;;  %v656_v25 = vmul.f32 %v654_v63, %v3362_v38  ;;  %v3368_v12 = vld [vmem:[#allocation39_spill] sm:$0xff] }
 0x2a0   :  { %1342 = vmatpush1.bf16.msra.mxu1 %v702_v7  ;;  %v659_v37 = vmul.f32 %v648_v47, %v3363_v8  ;;  %v1105_v33 = vmul.f32 %v1098_v18, %v1819_v46  ;;  %v1101_v40 = vsel %vm293_vm3, %v3364_v28, %v3352_v56  ;;  %v1100_v29 = vsel %vm293_vm3, %v3365_v57, %v3359_v43  ;;  %v3371_v47 = vld [vmem:[#allocation49_spill] sm:$0xff] }
 0x2a1   :  { %v2907_v16 = vpop.permute.xlu0 %1012  ;;  %v647_v6 = vpop.permute.xlu1 %646  ;;  %v665_v61 = vpack.c.bf16 %v661_v22, %v657_v44  ;;  %v1142_v46 = vmul.f32 %v1132_v17, %v1789_v21  ;;  %v666_v24 = vpack.c.bf16 %v662_v39, %v658_v2  ;;  %v1149_v48 = vpack.c.bf16 %v1145_v30, %v1141_v45  ;;  %v3367_v30 = vld [vmem:[#allocation36_spill] sm:$0xff]  ;;  %v3369_v22 = vld [vmem:[#allocation37_spill] sm:$0xff]  ;;  %v1462_v39 = vld [vmem:[%s3162_s1 + $0x20] sm:$0xff] }
 0x2a2   :  { %v649_v0 = vsel %vm57_vm7, %v3357_v54, %v647_v6  ;;  %v655_v27 = vsel %vm57_vm7, %v647_v6, %v3355_v36  ;;  %v1151_v1 = vpack.c.bf16 %v1147_v11, %v1143_v5  ;;  %v1148_v56 = vpack.c.bf16 %v2862_v59, %v1140_v23  ;;  %v3366_v54 = vld [vmem:[#allocation38_spill] sm:$0xff]  ;;  %v1460_v17 = vld [vmem:[%s3162_s1 + $0x38] sm:$0xff] }
 0x2a3   :  { %v660_v58 = vmul.f32 %v655_v27, %v3362_v38  ;;  %v663_v52 = vmul.f32 %v649_v0, %v3363_v8  ;;  %1261 = vmatprep.subr.bf16.mxu0 %v665_v61  ;;  %v1108_v4 = vmul.f32 %v1101_v40, %v1832_v53  ;;  %v1104_v36 = vmul.f32 %v1100_v29, %v1832_v53  ;;  %v1458_v53 = vld [vmem:[%s3162_s1 + $0x28] sm:$0xff]  ;;  %v1463_v0 = vld [vmem:[%s3162_s1] sm:$0xff] }
 0x2a4   :  { %v1150_v44 = vpack.c.bf16 %v1146_v31, %v1142_v46  ;;  %v1113_v21 = vpack.c.bf16 %v1109_v3, %v1105_v33  ;;  %v1061_v45 = vsel %vm231_vm4, %v3367_v30, %v3366_v54  ;;  %v1060_v59 = vsel %vm231_vm4, %v3369_v22, %v3368_v12  ;;  %v3378_v3 = vld [vmem:[#allocation72_spill] sm:$0xff]  ;;  %v3379_v40 = vld [vmem:[#allocation47_spill] sm:$0xff] }
 0x2a5   :  { %v664_v49 = vpack.c.bf16 %v660_v58, %v656_v25  ;;  %v2933_v42 = vpop.permute.xlu0 %944  ;;  %v1015_v9 = vpop.permute.xlu1 %1014  ;;  %v667_v19 = vpack.c.bf16 %v663_v52, %v659_v37  ;;  %v1077_v43 = vpack.c.bf16 %v1458_v53, %v1459_v20  ;;  %v1112_v18 = vpack.c.bf16 %v1108_v4, %v1104_v36  ;;  %v3373_v25 = vld [vmem:[#allocation46_spill] sm:$0xff]  ;;  %v3374_v58 = vld [vmem:[#allocation40_spill] sm:$0xff]  ;;  %v3375_v52 = vld [vmem:[#allocation41_spill] sm:$0xff] }
 0x2a6   :  { %v3372_v63 = vpack.c.bf16 %v3370_v14, %v3371_v47  ;;  %v1079_v6 = vpack.c.bf16 %v1460_v17, %v1461_v13  ;;  %v1069_v61 = vmul.f32 %v1061_v45, %v1881_v41  ;;  %v1065_v5 = vmul.f32 %v1060_v59, %v1881_v41  ;;  %v3377_v41 = vld [vmem:[#allocation70_spill] sm:$0xff]  ;;  %v3382_v46 = vld [vmem:[#allocation44_spill] sm:$0xff]  ;;  %v3385_v36 = vld [vmem:[#allocation61_spill] sm:$0xff] }
 0x2a7   :  { %1262 = vmatpush1.bf16.msra.mxu0 %v664_v49  ;;  %1343 = vmatprep.subr.bf16.mxu1 %v667_v19  ;;  %v1076_v27 = vpack.c.bf16 %v1462_v39, %v1463_v0  ;;  %v1021_v37 = vsel %vm173_vm5, %v1015_v9, %v3373_v25  ;;  %v3376_v23 = vpack.c.bf16 %v3374_v58, %v3375_v52  ;;  %v3380_v49 = vld [vmem:[#allocation71_spill] sm:$0xff]  ;;  %v3381_v19 = vld [vmem:[#allocation68_spill] sm:$0xff]  ;;  %v3389_v59 = vld [vmem:[#allocation57_spill] sm:$0xff] }
 0x2a8   :  { %1263 = vmatprep.subr.bf16.mxu0 %v1149_v48  ;;  %1344 = vmatpush1.bf16.msra.mxu1 %v666_v24  ;;  %v1078_v33 = vpack.c.bf16 %v3378_v3, %v3377_v41  ;;  %v1020_v57 = vsel %vm173_vm5, %v2907_v16, %v3379_v40  ;;  %v1073_v29 = vpack.c.bf16 %v1069_v61, %v1065_v5  ;;  %v3388_v22 = vld [vmem:[#allocation56_spill] sm:$0xff]  ;;  %v3391_v14 = vld [vmem:[#allocation53_spill] sm:$0xff]  ;;  %v3394_v61 = vld [vmem:[#allocation43_spill] sm:$0xff] }
 0x2a9   :  { %v2940_v34 = vpop.permute.xlu0 %892  ;;  %1345 = vmatprep.subr.bf16.mxu1 %v1151_v1  ;;  %v2942_v7 = vpop.permute.xlu1 %946  ;;  %v953_v31 = vsel %vm57_vm7, %v3381_v19, %v3380_v49  ;;  %v1023_v24 = vsel %vm173_vm5, %v3382_v46, %v1015_v9  ;;  %v1035_v48 = vmul.f32 %v1021_v37, %v1978_v51  ;;  %v3383_v1 = vld [vmem:[#allocation69_spill] sm:$0xff]  ;;  %v1031_v45 = vmul.f32 %v1020_v57, %v1978_v51  ;;  %v3397_v25 = vld [vmem:[#allocation59_spill] sm:$0xff]  ;;  %v3399_v58 = vld [vmem:[#allocation54_spill] sm:$0xff] }
 0x2aa   :  { %v3387_v9 = vld [vmem:[#allocation45_spill] sm:$0xff]  ;;  %v3390_v53 = vpack.c.bf16 %v3388_v22, %v3389_v59  ;;  %v3400_v52 = vld [vmem:[#allocation55_spill] sm:$0xff]  ;;  %v3402_v40 = vld [vmem:[#allocation50_spill] sm:$0xff] }
 0x2ab   :  { %1264 = vmatpush2.bf16.msra.mxu0 %v1148_v56  ;;  %v3384_v56 = vld [vmem:[#allocation67_spill] sm:$0xff]  ;;  %v1022_v30 = vsel %vm173_vm5, %v3387_v9, %v2907_v16  ;;  %v1039_v39 = vpack.c.bf16 %v1035_v48, %v1031_v45  ;;  %v3405_v48 = vld [vmem:[#allocation64_spill] sm:$0xff]  ;;  %v3408_v9 = vld [vmem:[#allocation10_spill] sm:$0xff] }
 0x2ac   :  { %1265 = vmatprep.subr.bf16.mxu0 %v1113_v21  ;;  %1346 = vmatpush2.bf16.msra.mxu1 %v1150_v44  ;;  %v952_v4 = vsel %vm57_vm7, %v3384_v56, %v3383_v1  ;;  %v3386_v21 = vld [vmem:[#allocation60_spill] sm:$0xff]  ;;  %v1030_v0 = vmul.f32 %v1022_v30, %v1975_v50  ;;  %v3403_v57 = vld [vmem:[#allocation51_spill] sm:$0xff] }
 0x2ad   :  { %v2958_v15 = vpop.permute.xlu0 %896  ;;  %1347 = vmatprep.subr.bf16.mxu1 %v3372_v63  ;;  %v2963_v11 = vpop.permute.xlu1 %898  ;;  %v3392_v63 = vld [vmem:[#allocation52_spill] sm:$0xff]  ;;  %v957_v51 = vmul.f32 %v952_v4, %v3356_v26 }
 0x2af   :  { %1266 = vmatpush2.bf16.msra.mxu0 %v1112_v18  ;;  %v1034_v18 = vmul.f32 %v1023_v24, %v1975_v50 }
 0x2b0   :  { %1348 = vmatpush2.bf16.msra.mxu1 %v3376_v23  ;;  %1267 = vmatprep.subr.bf16.mxu0 %v1077_v43  ;;  %v961_v43 = vmul.f32 %v953_v31, %v3356_v26  ;;  %v3401_v23 = vpack.c.bf16 %v3399_v58, %v3400_v52  ;;  %v3417_v52 = vld [vmem:[#allocation13_spill] sm:$0xff] }
 0x2b1   :  { %v977_v2 = vpop.permute.xlu0 %976  ;;  %v979_v28 = vpop.permute.xlu1 %978  ;;  %1349 = vmatprep.subr.bf16.mxu1 %v1079_v6  ;;  %v3393_v6 = vld [vmem:[#allocation42_spill] sm:$0xff] }
 0x2b2   :  { %v984_v44 = vsel %vm115_vm6, %v977_v2, %v3385_v36  ;;  %v985_v54 = vsel %vm115_vm6, %v979_v28, %v3386_v21  ;;  %v986_v47 = vsel %vm115_vm6, %v3391_v14, %v977_v2  ;;  %v987_v16 = vsel %vm115_vm6, %v3392_v63, %v979_v28  ;;  %v3410_v14 = vld [vmem:[#allocation63_spill] sm:$0xff]  ;;  %v3412_v63 = vld [vmem:[#allocation17_spill] sm:$0xff] }
 0x2b3   :  { %1268 = vmatpush2.bf16.msra.mxu0 %v1076_v27  ;;  %v995_v17 = vmul.f32 %v984_v44, %v3347_v62  ;;  %v999_v13 = vmul.f32 %v985_v54, %v3347_v62  ;;  %v3395_v5 = vpack.c.bf16 %v3393_v6, %v3394_v61  ;;  %v3396_v27 = vld [vmem:[#allocation58_spill] sm:$0xff]  ;;  %v954_v62 = vsel %vm57_vm7, %v2933_v42, %v3384_v56  ;;  %v3406_v56 = vld [vmem:[#allocation65_spill] sm:$0xff] }
 0x2b4   :  { %1269 = vmatprep.subr.bf16.mxu0 %v1073_v29  ;;  %1350 = vmatpush2.bf16.msra.mxu1 %v1078_v33  ;;  %v3398_v37 = vpack.c.bf16 %v3396_v27, %v3397_v25  ;;  %v994_v26 = vmul.f32 %v986_v47, %v3348_v60  ;;  %v998_v41 = vmul.f32 %v987_v16, %v3348_v60  ;;  %v3413_v16 = vld [vmem:[#allocation11_spill] sm:$0xff]  ;;  %v3414_v61 = vld [vmem:[#allocation14_spill] sm:$0xff]  ;;  %v1322_v25 = vpop.f32.mrf.mxu1 }
 0x2b5   :  { %v3014_v12 = vpop.permute.xlu0 %888  ;;  %1351 = vmatprep.subr.bf16.mxu1 %v3390_v53  ;;  %v895_v20 = vpop.permute.xlu1 %894  ;;  %v1038_v33 = vpack.c.bf16 %v1034_v18, %v1030_v0  ;;  %v955_v2 = vsel %vm57_vm7, %v2942_v7, %v3381_v19  ;;  %v3404_v29 = vpack.c.bf16 %v3402_v40, %v3403_v57  ;;  %v1003_v31 = vpack.c.bf16 %v999_v13, %v995_v17  ;;  %v3409_v18 = vld [vmem:[#allocation62_spill] sm:$0xff] }
 0x2b6   :  { %v907_v28 = vsel %vm467_vm8, %v895_v20, %v2963_v11  ;;  %v965_v46 = vpack.c.bf16 %v961_v43, %v957_v51  ;;  %v956_v60 = vmul.f32 %v954_v62, %v3362_v38  ;;  %v3407_v4 = vpack.c.bf16 %v3405_v48, %v3406_v56  ;;  %v3419_v48 = vld [vmem:[#allocation19_spill] sm:$0xff] }
 0x2b7   :  { %1270 = vmatpush2.bf16.msra.mxu0 %v3395_v5  ;;  %v960_v36 = vmul.f32 %v955_v2, %v3362_v38  ;;  %v906_v44 = vsel %vm467_vm8, %v2940_v34, %v2958_v15  ;;  %v1002_v21 = vpack.c.bf16 %v998_v41, %v994_v26  ;;  %v917_v30 = vmul.f32 %v907_v28, %v3408_v9  ;;  %v3418_v2 = vld [vmem:[#allocation12_spill] sm:$0xff] }
 0x2b8   :  { %1271 = vmatprep.subr.bf16.mxu0 %v3398_v37  ;;  %1352 = vmatpush2.bf16.msra.mxu1 %v3401_v23  ;;  %v3411_v47 = vpack.c.bf16 %v3409_v18, %v3410_v14  ;;  %v3416_v37 = vld [vmem:[#allocation15_spill] sm:$0xff] }
 0x2b9   :  { %v941_v3 = vpop.permute.xlu0 %940  ;;  %1353 = vmatprep.subr.bf16.mxu1 %v1039_v39  ;;  %v891_v50 = vpop.permute.xlu1 %890  ;;  %v3415_v39 = vld [vmem:[#allocation16_spill] sm:$0xff] }
 0x2ba   :  { %v948_v24 = vsel %vm57_vm7, %v941_v3, %v2933_v42  ;;  %v950_v19 = vsel %vm57_vm7, %v3383_v1, %v941_v3  ;;  %v908_v42 = vsel %vm467_vm8, %v3014_v12, %v2940_v34  ;;  %v909_v45 = vsel %vm467_vm8, %v891_v50, %v895_v20  ;;  %v1324_v3 = vpop.f32.mrf.mxu1 }
 0x2bb   :  { %1272 = vmatpush2.bf16.msra.mxu0 %v3404_v29  ;;  %v958_v59 = vmul.f32 %v950_v19, %v3361_v55  ;;  %v959_v34 = vmul.f32 %v948_v24, %v3363_v8  ;;  %v913_v20 = vmul.f32 %v906_v44, %v3408_v9  ;;  %v916_v51 = vmul.f32 %v909_v45, %v3413_v16 }
 0x2bc   :  { %1273 = vmatprep.subr.bf16.mxu0 %v3407_v4  ;;  %1354 = vmatpush2.bf16.msra.mxu1 %v1038_v33  ;;  %v1326_v24 = vpop.f32.mrf.mxu1 }
 0x2bd   :  { %v1201_v54 = vpop.permute.xlu0 %1200  ;;  %1355 = vmatprep.subr.bf16.mxu1 %v1003_v31  ;;  %v943_v1 = vpop.permute.xlu1 %942  ;;  %v921_v27 = vpack.c.bf16 %v917_v30, %v913_v20  ;;  %v3421_v30 = vld [vmem:[#allocation18_spill] sm:$0xff] }
 0x2be   :  { %v949_v38 = vsel %vm57_vm7, %v943_v1, %v2942_v7  ;;  %v951_v22 = vsel %vm57_vm7, %v3380_v49, %v943_v1  ;;  %v1210_v7 = vsel %vm467_vm8, %v1201_v54, %v3412_v63  ;;  %v964_v49 = vpack.c.bf16 %v960_v36, %v956_v60  ;;  %v1453_v60 = vld [vmem:[%s3163_s4] ss:$12 sps:$4 sm:$0xff]   ;;  %v1327_v44 = vpop.f32.mrf.mxu1 }
 0x2bf   :  { %v962_v53 = vmul.f32 %v951_v22, %v3361_v55  ;;  %v963_v43 = vmul.f32 %v949_v38, %v3363_v8  ;;  %1274 = vmatpush2.bf16.msra.mxu0 %v3411_v47  ;;  %v912_v8 = vmul.f32 %v908_v42, %v3413_v16  ;;  %v1204_v58 = vsel %vm467_vm8, %v3416_v37, %v1201_v54  ;;  %v3422_v38 = vld [vmem:[#allocation20_spill] sm:$0xff]  ;;  %v3424_v47 = vld [vmem:[#allocation66_spill] sm:$0xff] }
 0x2c0   :  { %1275 = vmatprep.subr.bf16.mxu0 %v965_v46  ;;  %1356 = vmatpush2.bf16.msra.mxu1 %v1002_v21  ;;  %v1215_v23 = vmul.f32 %v1210_v7, %v3417_v52  ;;  %v1214_v31 = vmul.f32 %v1204_v58, %v3418_v2 }
 0x2c1   :  { %v966_v17 = vpack.c.bf16 %v962_v53, %v958_v59  ;;  %v901_v13 = vpop.permute.xlu0 %900  ;;  %v1203_v55 = vpop.permute.xlu1 %1202  ;;  %v967_v6 = vpack.c.bf16 %v963_v43, %v959_v34  ;;  %v920_v33 = vpack.c.bf16 %v916_v51, %v912_v8  ;;  %v3423_v43 = vmov 0  }
 0x2c2   :  { %v1205_v5 = vsel %vm467_vm8, %v3414_v61, %v1203_v55  ;;  %v1211_v0 = vsel %vm467_vm8, %v1203_v55, %v3415_v39  ;;  %v904_v62 = vsel %vm467_vm8, %v2958_v15, %v901_v13  ;;  %v910_v41 = vsel %vm467_vm8, %v901_v13, %v3014_v12 }
 0x2c3   :  { %v1219_v26 = vmul.f32 %v1211_v0, %v3417_v52  ;;  %1276 = vmatpush2.bf16.msra.mxu0 %v964_v49  ;;  %1357 = vmatprep.subr.bf16.mxu1 %v967_v6  ;;  %v1218_v28 = vmul.f32 %v1205_v5, %v3418_v2  ;;  %v914_v15 = vmul.f32 %v904_v62, %v3418_v2 }
 0x2c4   :  { %1277 = vmatprep.subr.bf16.mxu0 %v921_v27  ;;  %1358 = vmatpush2.bf16.msra.mxu1 %v966_v17  ;;  %v915_v19 = vmul.f32 %v910_v41, %v3417_v52 }
 0x2c5   :  { %v1165_v40 = vpop.permute.xlu0 %1164  ;;  %v903_v57 = vpop.permute.xlu1 %902  ;;  %v1223_v29 = vpack.c.bf16 %v1219_v26, %v1215_v23  ;;  %v1222_v21 = vpack.c.bf16 %v1218_v28, %v1214_v31 }
 0x2c6   :  { %v905_v46 = vsel %vm467_vm8, %v2963_v11, %v903_v57  ;;  %v911_v12 = vsel %vm467_vm8, %v903_v57, %v891_v50  ;;  %v1168_v56 = vsel %vm409_vm0, %v3419_v48, %v1165_v40  ;;  %v3420_v11 = vld [vmem:[#allocation21_spill] sm:$0xff] }
 0x2c7   :  { %v918_v4 = vmul.f32 %v905_v46, %v3418_v2  ;;  %v919_v36 = vmul.f32 %v911_v12, %v3417_v52  ;;  %1278 = vmatpush2.bf16.msra.mxu0 %v920_v33  ;;  %v1174_v50 = vsel %vm409_vm0, %v1165_v40, %v3420_v11  ;;  %v1178_v9 = vmul.f32 %v1168_v56, %v1708_v35 }
 0x2c8   :  { %1382 = vmatprep.subr.bf16.mxu0 %v1223_v29  ;;  %v1179_v59 = vmul.f32 %v1174_v50, %v1701_v32 }
 0x2c9   :  { %v922_v42 = vpack.c.bf16 %v918_v4, %v914_v15  ;;  %v1167_v54 = vpop.permute.xlu1 %1166  ;;  %v923_v1 = vpack.c.bf16 %v919_v36, %v915_v19 }
 0x2ca   :  { %v1169_v45 = vsel %vm409_vm0, %v3421_v30, %v1167_v54  ;;  %v1175_v22 = vsel %vm409_vm0, %v1167_v54, %v3422_v38  ;;  %1280 = vmatmul.mubr.bf16.vlgmr.msra.gmra.mxu0 %v1453_v60 }
 0x2cb   :  { %v1182_v34 = vmul.f32 %v1169_v45, %v1708_v35  ;;  %v1183_v53 = vmul.f32 %v1175_v22, %v1701_v32  ;;  %1359 = vmatprep.subr.bf16.mxu1 %v923_v1  ;;  %1383 = vmatpush1.bf16.msra.mxu0 %v1222_v21 }
 0x2cc   :  { %1360 = vmatpush2.bf16.msra.mxu1 %v922_v42  ;;  %1402 = vmatprep.mubr.bf16.mxu0 %v3423_v43 }
 0x2cd   :  { %v1186_v18 = vpack.c.bf16 %v1182_v34, %v1178_v9  ;;  %v1187_v14 = vpack.c.bf16 %v1183_v53, %v1179_v59 }
 0x2cf   :  { %1362 = vmatmul.mubr.bf16.vlgmr.msra.gmra.mxu1 %v1453_v60  ;;  %1384 = vmatprep.subr.bf16.mxu0 %v1187_v14 }
 0x2d0   :  { %1385 = vmatpush1.bf16.msra.mxu0 %v1186_v18 }
 0x2d3   :  { %1439 = vmatmul.mubr.msk.bf16.vlgmr.msra.gmra.mxu0 %vm1243_vm1, %v3424_v47 }
 0x38a   :  { %v1281_v10 = vpop.f32.mrf.mxu0 }
 0x38b   :  { %v1323_v20 = vadd.f32 %v1322_v25, %v1281_v10 }
 0x38c   :  { %v1283_v63 = vpop.f32.mrf.mxu0 }
 0x38d   :  { %vm1411_vm0 = vcmp.ge.f32.partialorder %v1323_v20, 0.0  ;;  %v1415_v35 = vmul.f32 0.1, %v1323_v20  ;;  %v1325_v7 = vadd.f32 %v1324_v3, %v1283_v63 }
 0x38e   :  { %v1285_v32 = vpop.f32.mrf.mxu0 }
 0x38f   :  { %v1419_v49 = vsel %vm1411_vm0, %v1323_v20, %v1415_v35  ;;  %vm1412_vm2 = vcmp.ge.f32.partialorder %v1325_v7, 0.0  ;;  %v1416_v16 = vmul.f32 0.1, %v1325_v7  ;;  %v1363_v51 = vpop.f32.mrf.mxu1 }
 0x390   :  { %1423 = vst [vmem:[%s3164_s5] sm:$0xff] %v1419_v49  ;;  %v1286_v17 = vpop.f32.mrf.mxu0 }
 0x391   :  { %v1420_v13 = vsel %vm1412_vm2, %v1325_v7, %v1416_v16  ;;  %v1365_v55 = vpop.f32.mrf.mxu1 }
 0x392   :  { %1424 = vst [vmem:[%s3164_s5 + $0x8] sm:$0xff] %v1420_v13 }
 0x393   :  { %v1367_v6 = vpop.f32.mrf.mxu1  ;;  %v1404_v8 = vpop.f32.mrf.mxu0 }
 0x394   :  { %v1405_v61 = vadd.f32 %v1404_v8, %v1363_v51 }
 0x395   :  { %v1368_v5 = vpop.f32.mrf.mxu1  ;;  %v1406_v39 = vpop.f32.mrf.mxu0 }
 0x396   :  { %vm1413_vm3 = vcmp.ge.f32.partialorder %v1405_v61, 0.0  ;;  %v1417_v0 = vmul.f32 0.1, %v1405_v61  ;;  %v1407_v27 = vadd.f32 %v1406_v39, %v1365_v55 }
 0x397   :  { %v1408_v25 = vpop.f32.mrf.mxu0 }
 0x398   :  { %v1421_v37 = vsel %vm1413_vm3, %v1405_v61, %v1417_v0  ;;  %vm1414_vm4 = vcmp.ge.f32.partialorder %v1407_v27, 0.0  ;;  %v1418_v58 = vmul.f32 0.1, %v1407_v27 }
 0x399   :  { %1425 = vst [vmem:[%s3164_s5 + $0x10] sm:$0xff] %v1421_v37  ;;  %v1409_v52 = vpop.f32.mrf.mxu0 }
 0x39a   :  { %v1422_v23 = vsel %vm1414_vm4, %v1407_v27, %v1418_v58 }
 0x39b   :  { %1426 = vst [vmem:[%s3164_s5 + $0x18] sm:$0xff] %v1422_v23 }

</bundles_post_ra>
